<compile_context>
chip_gen: v7x
topology: tpu7x:2x2x1
jax: 0.10.0
libtpu: 0.0.40
codegen_flags: <defaults>
</compile_context>

<pallas_src>
import numpy as np
import jax
import jax.numpy as jnp
from jax import lax
from jax.experimental import pallas as pl
from jax.experimental.pallas import tpu as pltpu

H = 32            # hidden_layer_size  (4H = 128 -> one full-lane-width gate vreg)
NUM_LAYERS = 2
INPUT_SIZE = 1
OUTPUT_SIZE = 1


def lstm_model_kernel(x_ref,                        # (T*B, 1)  time-major rows t*B+b
                      w1_ref, b1_ref,               # (1, H), (1, H)
                      wih0_ref, whh0_ref, bg0_ref,  # (H, 4H), (H, 4H), (1, 4H)
                      wih1_ref, whh1_ref, bg1_ref,  # (H, 4H), (H, 4H), (1, 4H)
                      w2_ref, b2_ref,               # (1, 2H), (1, 1)
                      out_ref,                      # (B, 1)
                      g0_ref):                      # scratch VMEM (T*B, 4H) f32
    B = out_ref.shape[0]
    TB = x_ref.shape[0]
    T = TB // B
    h = whh0_ref.shape[0]

    # ---- prologue (off the recurrence critical path): one batched matmul -----
    x = x_ref[...]                                              # (T*B, 1)
    a = jnp.maximum(x * w1_ref[...] + b1_ref[...], 0.0)         # (T*B, H)  linear_1 + ReLU
    g0_ref[...] = (jnp.dot(a, wih0_ref[...],
                           preferred_element_type=jnp.float32)
                   + bg0_ref[...])                              # (T*B, 4H)

    # hoist weight loads out of the loop
    whh0 = whh0_ref[...]
    wih1 = wih1_ref[...]
    whh1 = whh1_ref[...]
    bg1 = bg1_ref[...]

    def step(t, carry):
        h0, c0, h1, c1 = carry
        row = pl.multiple_of(t * B, 8)
        g0 = g0_ref[pl.ds(row, B), :]                           # (B, 4H) precomputed

        # ---- layer 1 recurrent contribution: depends only on h1(t-1) --------
        # (issued here so it can overlap the layer-0 cell; off the serial chain)
        r1 = jnp.dot(h1, whh1, preferred_element_type=jnp.float32) + bg1

        # ---- layer 0: single recurrent matmul on the serial chain ------------
        gates0 = g0 + jnp.dot(h0, whh0, preferred_element_type=jnp.float32)
        # 2 full-vreg EUP pushes/cell; tanh over i/f/o lanes and sigmoid over g
        # lanes are computed and discarded (intentional).
        s0 = jax.nn.sigmoid(gates0)
        q0 = jnp.tanh(gates0)
        c0 = s0[:, h:2 * h] * c0 + s0[:, 0:h] * q0[:, 2 * h:3 * h]
        h0 = s0[:, 3 * h:4 * h] * jnp.tanh(c0)

        # ---- layer 1: only the input projection is serially dependent --------
        gates1 = r1 + jnp.dot(h0, wih1, preferred_element_type=jnp.float32)
        s1 = jax.nn.sigmoid(gates1)
        q1 = jnp.tanh(gates1)
        c1 = s1[:, h:2 * h] * c1 + s1[:, 0:h] * q1[:, 2 * h:3 * h]
        h1 = s1[:, 3 * h:4 * h] * jnp.tanh(c1)
        return (h0, c0, h1, c1)

    zeros = jnp.zeros((B, h), jnp.float32)
    h0, c0, h1, c1 = lax.fori_loop(0, T, step, (zeros, zeros, zeros, zeros),
                                   unroll=True)

    # h_n.permute(1, 0, 2).reshape(B, -1): layer-0 state in lanes [0,H),
    # layer-1 state in lanes [H,2H).  Split the W2 lanes instead of concatenating.
    # TODO(synk): nn.Dropout(0.2) implemented with inference semantics (identity).
    w2 = w2_ref[...]                                            # (1, 2H)
    pred = (jnp.sum(h0 * w2[:, 0:h], axis=1, keepdims=True)
            + jnp.sum(h1 * w2[:, h:2 * h], axis=1, keepdims=True)
            + b2_ref[...])                                      # (B, 1)
    out_ref[...] = pred                                         # predictions[:, -1] == col 0


def make_params(key):
    """Deterministic parameter init (shapes match the PyTorch module)."""
    ks = jax.random.split(key, 8)
    fan_ih = float(H)
    p = {
        # linear_1: (H, 1) weight, (H,) bias
        "W1": jax.random.normal(ks[0], (H, INPUT_SIZE), jnp.float32) * 0.5,
        "b1": jax.random.normal(ks[1], (H,), jnp.float32) * 0.1,
        # LSTM layer 0 (kaiming-ish ih, scaled normal standing in for orthogonal, zero biases)
        "Wih0": jax.random.normal(ks[2], (4 * H, H), jnp.float32) * np.sqrt(2.0 / fan_ih),
        "Whh0": jax.random.normal(ks[3], (4 * H, H), jnp.float32) * 0.3,
        "bih0": jnp.zeros((4 * H,), jnp.float32),
        "bhh0": jnp.zeros((4 * H,), jnp.float32),
        # LSTM layer 1
        "Wih1": jax.random.normal(ks[4], (4 * H, H), jnp.float32) * np.sqrt(2.0 / fan_ih),
        "Whh1": jax.random.normal(ks[5], (4 * H, H), jnp.float32) * 0.3,
        "bih1": jnp.zeros((4 * H,), jnp.float32),
        "bhh1": jnp.zeros((4 * H,), jnp.float32),
        # linear_2: (1, 2H) weight, (1,) bias
        "W2": jax.random.normal(ks[6], (OUTPUT_SIZE, NUM_LAYERS * H), jnp.float32) * 0.2,
        "b2": jax.random.normal(ks[7], (OUTPUT_SIZE,), jnp.float32) * 0.1,
    }
    return p


@jax.jit
def lstm_model_forward(x, p):
    """x: (B, T, 1) batch-first, like the PyTorch module. Returns (B,)."""
    B, T, _ = x.shape
    B_pad = ((B + 7) // 8) * 8                                   # pad batch to sublane multiple

    x_tb = jnp.transpose(x, (1, 0, 2)).astype(jnp.float32)       # (T, B, 1)
    if B_pad != B:
        x_tb = jnp.pad(x_tb, ((0, 0), (0, B_pad - B), (0, 0)))
    x_flat = x_tb.reshape(T * B_pad, 1)                          # row index = t*B_pad + b

    args = (
        x_flat,
        p["W1"].T.reshape(1, H), p["b1"].reshape(1, H),
        p["Wih0"].T, p["Whh0"].T, (p["bih0"] + p["bhh0"]).reshape(1, 4 * H),
        p["Wih1"].T, p["Whh1"].T, (p["bih1"] + p["bhh1"]).reshape(1, 4 * H),
        p["W2"].reshape(1, NUM_LAYERS * H), p["b2"].reshape(1, 1),
    )

    out = pl.pallas_call(
        lstm_model_kernel,
        out_shape=jax.ShapeDtypeStruct((B_pad, 1), jnp.float32),
        in_specs=[pl.BlockSpec(memory_space=pltpu.MemorySpace.VMEM)] * len(args),
        out_specs=pl.BlockSpec(memory_space=pltpu.MemorySpace.VMEM),
        scratch_shapes=[pltpu.VMEM((T * B_pad, 4 * H), jnp.float32)],
    )(*args)
    return out[:B, 0]


def reference_forward(x, p):
    """Pure-JAX reference matching the PyTorch forward (eval mode)."""
    B, T, _ = x.shape
    a = jax.nn.relu(x @ p["W1"].T + p["b1"])                     # (B, T, H)

    def cell(Wih, Whh, bih, bhh, inp, hc):
        hh, cc = hc
        g = inp @ Wih.T + hh @ Whh.T + bih + bhh
        i, f, gg, o = jnp.split(g, 4, axis=1)
        cc = jax.nn.sigmoid(f) * cc + jax.nn.sigmoid(i) * jnp.tanh(gg)
        hh = jax.nn.sigmoid(o) * jnp.tanh(cc)
        return hh, cc

    z = jnp.zeros((B, H), jnp.float32)

    def step(carry, at):
        (h0, c0), (h1, c1) = carry
        h0, c0 = cell(p["Wih0"], p["Whh0"], p["bih0"], p["bhh0"], at, (h0, c0))
        h1, c1 = cell(p["Wih1"], p["Whh1"], p["bih1"], p["bhh1"], h0, (h1, c1))
        return ((h0, c0), (h1, c1)), None

    ((h0, _), (h1, _)), _ = lax.scan(step, ((z, z), (z, z)),
                                     jnp.transpose(a, (1, 0, 2)))
    hcat = jnp.concatenate([h0, h1], axis=1)                     # (B, 2H)
    pred = hcat @ p["W2"].T + p["b2"]                            # (B, 1)
    return pred[:, -1]


if __name__ == "__main__":
    key = jax.random.PRNGKey(0)
    pkey, xkey = jax.random.split(key)
    params = make_params(pkey)

    B, T = 2, 8
    x = jax.random.normal(xkey, (B, T, INPUT_SIZE), jnp.float32)

    out = lstm_model_forward(x, params)
    out = jax.block_until_ready(out)

    ref = reference_forward(x, params)
    np.testing.assert_allclose(np.asarray(out), np.asarray(ref), rtol=1e-4, atol=1e-4)

    print("KERNEL_OK")
</pallas_src>

<mosaic_0001>
module attributes {stable_mosaic.version = 11 : i64} {
  func.func @lstm_model_kernel(%arg0: memref<64x1xf32, #tpu.memory_space<vmem>>, %arg1: memref<1x32xf32, #tpu.memory_space<vmem>>, %arg2: memref<1x32xf32, #tpu.memory_space<vmem>>, %arg3: memref<32x128xf32, #tpu.memory_space<vmem>>, %arg4: memref<32x128xf32, #tpu.memory_space<vmem>>, %arg5: memref<1x128xf32, #tpu.memory_space<vmem>>, %arg6: memref<32x128xf32, #tpu.memory_space<vmem>>, %arg7: memref<32x128xf32, #tpu.memory_space<vmem>>, %arg8: memref<1x128xf32, #tpu.memory_space<vmem>>, %arg9: memref<1x64xf32, #tpu.memory_space<vmem>>, %arg10: memref<1x1xf32, #tpu.memory_space<vmem>>, %arg11: memref<8x1xf32, #tpu.memory_space<vmem>>, %arg12: memref<64x128xf32, #tpu.memory_space<vmem>>) attributes {dimension_semantics = [], scalar_prefetch = 0 : i64, scratch_operands = 1 : i64, tpu.core_type = #tpu.core_type<tc>} {
    %c0 = arith.constant 0 : index
    %c0_0 = arith.constant 0 : index
    %0 = vector.load %arg0[%c0, %c0_0] : memref<64x1xf32, #tpu.memory_space<vmem>>, vector<64x1xf32>
    %c0_1 = arith.constant 0 : index
    %c0_2 = arith.constant 0 : index
    %1 = vector.load %arg1[%c0_1, %c0_2] : memref<1x32xf32, #tpu.memory_space<vmem>>, vector<1x32xf32>
    %2 = vector.broadcast %0 : vector<64x1xf32> to vector<64x32xf32>
    %3 = vector.broadcast %1 : vector<1x32xf32> to vector<64x32xf32>
    %4 = arith.mulf %2, %3 : vector<64x32xf32>
    %c0_3 = arith.constant 0 : index
    %c0_4 = arith.constant 0 : index
    %5 = vector.load %arg2[%c0_3, %c0_4] : memref<1x32xf32, #tpu.memory_space<vmem>>, vector<1x32xf32>
    %6 = vector.broadcast %5 : vector<1x32xf32> to vector<64x32xf32>
    %7 = arith.addf %4, %6 : vector<64x32xf32>
    %cst = arith.constant 0.000000e+00 : f32
    %8 = vector.broadcast %cst : f32 to vector<64x32xf32>
    %9 = arith.maximumf %7, %8 : vector<64x32xf32>
    %c0_5 = arith.constant 0 : index
    %c0_6 = arith.constant 0 : index
    %10 = vector.load %arg3[%c0_5, %c0_6] : memref<32x128xf32, #tpu.memory_space<vmem>>, vector<32x128xf32>
    %cst_7 = arith.constant dense<0.000000e+00> : vector<64x128xf32>
    %11 = tpu.matmul %9, %10, %cst_7 {dimension_numbers = #tpu.dot_dimension_numbers<[1], [0], [0], [1], [0, 0, 1, 1], [], []>} : vector<64x32xf32>, vector<32x128xf32>, vector<64x128xf32> -> vector<64x128xf32>
    %c0_8 = arith.constant 0 : index
    %c0_9 = arith.constant 0 : index
    %12 = vector.load %arg5[%c0_8, %c0_9] : memref<1x128xf32, #tpu.memory_space<vmem>>, vector<1x128xf32>
    %13 = vector.broadcast %12 : vector<1x128xf32> to vector<64x128xf32>
    %14 = arith.addf %11, %13 : vector<64x128xf32>
    %c0_10 = arith.constant 0 : index
    %c0_11 = arith.constant 0 : index
    %15 = vector.load %arg12[%c0_10, %c0_11] : memref<64x128xf32, #tpu.memory_space<vmem>>, vector<64x128xf32>
    tpu.vector_store %arg12[%c0_10, %c0_11], %14 {strides = array<i32>} : memref<64x128xf32, #tpu.memory_space<vmem>>, vector<64x128xf32>,
    %c0_12 = arith.constant 0 : index
    %c0_13 = arith.constant 0 : index
    %16 = vector.load %arg4[%c0_12, %c0_13] : memref<32x128xf32, #tpu.memory_space<vmem>>, vector<32x128xf32>
    %c0_14 = arith.constant 0 : index
    %c0_15 = arith.constant 0 : index
    %17 = vector.load %arg6[%c0_14, %c0_15] : memref<32x128xf32, #tpu.memory_space<vmem>>, vector<32x128xf32>
    %c0_16 = arith.constant 0 : index
    %c0_17 = arith.constant 0 : index
    %18 = vector.load %arg7[%c0_16, %c0_17] : memref<32x128xf32, #tpu.memory_space<vmem>>, vector<32x128xf32>
    %c0_18 = arith.constant 0 : index
    %c0_19 = arith.constant 0 : index
    %19 = vector.load %arg8[%c0_18, %c0_19] : memref<1x128xf32, #tpu.memory_space<vmem>>, vector<1x128xf32>
    %cst_20 = arith.constant 0.000000e+00 : f32
    %20 = vector.broadcast %cst_20 : f32 to vector<8x32xf32>
    %c0_i32 = arith.constant 0 : i32
    %c8_i32 = arith.constant 8 : i32
    %21 = arith.muli %c0_i32, %c8_i32 : i32
    %22 = tpu.assume_multiple %21, 8 : i32
    %23 = arith.index_cast %22 : i32 to index
    %c0_21 = arith.constant 0 : index
    %24 = vector.load %arg12[%23, %c0_21] : memref<64x128xf32, #tpu.memory_space<vmem>>, vector<8x128xf32>
    %cst_22 = arith.constant dense<0.000000e+00> : vector<8x128xf32>
    %25 = tpu.matmul %20, %18, %cst_22 {dimension_numbers = #tpu.dot_dimension_numbers<[1], [0], [0], [1], [0, 0, 1, 1], [], []>} : vector<8x32xf32>, vector<32x128xf32>, vector<8x128xf32> -> vector<8x128xf32>
    %26 = vector.broadcast %19 : vector<1x128xf32> to vector<8x128xf32>
    %27 = arith.addf %25, %26 : vector<8x128xf32>
    %cst_23 = arith.constant dense<0.000000e+00> : vector<8x128xf32>
    %28 = tpu.matmul %20, %16, %cst_23 {dimension_numbers = #tpu.dot_dimension_numbers<[1], [0], [0], [1], [0, 0, 1, 1], [], []>} : vector<8x32xf32>, vector<32x128xf32>, vector<8x128xf32> -> vector<8x128xf32>
    %29 = arith.addf %24, %28 : vector<8x128xf32>
    %30 = arith.negf %29 : vector<8x128xf32>
    %31 = math.exp %30 : vector<8x128xf32>
    %cst_24 = arith.constant 1.000000e+00 : f32
    %32 = vector.broadcast %cst_24 : f32 to vector<8x128xf32>
    %33 = arith.addf %32, %31 : vector<8x128xf32>
    %34 = arith.divf %32, %33 : vector<8x128xf32>
    %35 = math.tanh %29 : vector<8x128xf32>
    %36 = vector.extract_strided_slice %34 {offsets = [0, 32], sizes = [8, 32], strides = [1, 1]} : vector<8x128xf32> to vector<8x32xf32>
    %37 = arith.mulf %36, %20 : vector<8x32xf32>
    %38 = vector.extract_strided_slice %34 {offsets = [0, 0], sizes = [8, 32], strides = [1, 1]} : vector<8x128xf32> to vector<8x32xf32>
    %39 = vector.extract_strided_slice %35 {offsets = [0, 64], sizes = [8, 32], strides = [1, 1]} : vector<8x128xf32> to vector<8x32xf32>
    %40 = arith.mulf %38, %39 : vector<8x32xf32>
    %41 = arith.addf %37, %40 : vector<8x32xf32>
    %42 = vector.extract_strided_slice %34 {offsets = [0, 96], sizes = [8, 32], strides = [1, 1]} : vector<8x128xf32> to vector<8x32xf32>
    %43 = math.tanh %41 : vector<8x32xf32>
    %44 = arith.mulf %42, %43 : vector<8x32xf32>
    %cst_25 = arith.constant dense<0.000000e+00> : vector<8x128xf32>
    %45 = tpu.matmul %44, %17, %cst_25 {dimension_numbers = #tpu.dot_dimension_numbers<[1], [0], [0], [1], [0, 0, 1, 1], [], []>} : vector<8x32xf32>, vector<32x128xf32>, vector<8x128xf32> -> vector<8x128xf32>
    %46 = arith.addf %27, %45 : vector<8x128xf32>
    %47 = arith.negf %46 : vector<8x128xf32>
    %48 = math.exp %47 : vector<8x128xf32>
    %cst_26 = arith.constant 1.000000e+00 : f32
    %49 = vector.broadcast %cst_26 : f32 to vector<8x128xf32>
    %50 = arith.addf %49, %48 : vector<8x128xf32>
    %51 = arith.divf %49, %50 : vector<8x128xf32>
    %52 = math.tanh %46 : vector<8x128xf32>
    %53 = vector.extract_strided_slice %51 {offsets = [0, 32], sizes = [8, 32], strides = [1, 1]} : vector<8x128xf32> to vector<8x32xf32>
    %54 = arith.mulf %53, %20 : vector<8x32xf32>
    %55 = vector.extract_strided_slice %51 {offsets = [0, 0], sizes = [8, 32], strides = [1, 1]} : vector<8x128xf32> to vector<8x32xf32>
    %56 = vector.extract_strided_slice %52 {offsets = [0, 64], sizes = [8, 32], strides = [1, 1]} : vector<8x128xf32> to vector<8x32xf32>
    %57 = arith.mulf %55, %56 : vector<8x32xf32>
    %58 = arith.addf %54, %57 : vector<8x32xf32>
    %59 = vector.extract_strided_slice %51 {offsets = [0, 96], sizes = [8, 32], strides = [1, 1]} : vector<8x128xf32> to vector<8x32xf32>
    %60 = math.tanh %58 : vector<8x32xf32>
    %61 = arith.mulf %59, %60 : vector<8x32xf32>
    %c1_i32 = arith.constant 1 : i32
    %c8_i32_27 = arith.constant 8 : i32
    %62 = arith.muli %c1_i32, %c8_i32_27 : i32
    %63 = tpu.assume_multiple %62, 8 : i32
    %64 = arith.index_cast %63 : i32 to index
    %c0_28 = arith.constant 0 : index
    %65 = vector.load %arg12[%64, %c0_28] : memref<64x128xf32, #tpu.memory_space<vmem>>, vector<8x128xf32>
    %cst_29 = arith.constant dense<0.000000e+00> : vector<8x128xf32>
    %66 = tpu.matmul %61, %18, %cst_29 {dimension_numbers = #tpu.dot_dimension_numbers<[1], [0], [0], [1], [0, 0, 1, 1], [], []>} : vector<8x32xf32>, vector<32x128xf32>, vector<8x128xf32> -> vector<8x128xf32>
    %67 = vector.broadcast %19 : vector<1x128xf32> to vector<8x128xf32>
    %68 = arith.addf %66, %67 : vector<8x128xf32>
    %cst_30 = arith.constant dense<0.000000e+00> : vector<8x128xf32>
    %69 = tpu.matmul %44, %16, %cst_30 {dimension_numbers = #tpu.dot_dimension_numbers<[1], [0], [0], [1], [0, 0, 1, 1], [], []>} : vector<8x32xf32>, vector<32x128xf32>, vector<8x128xf32> -> vector<8x128xf32>
    %70 = arith.addf %65, %69 : vector<8x128xf32>
    %71 = arith.negf %70 : vector<8x128xf32>
    %72 = math.exp %71 : vector<8x128xf32>
    %cst_31 = arith.constant 1.000000e+00 : f32
    %73 = vector.broadcast %cst_31 : f32 to vector<8x128xf32>
    %74 = arith.addf %73, %72 : vector<8x128xf32>
    %75 = arith.divf %73, %74 : vector<8x128xf32>
    %76 = math.tanh %70 : vector<8x128xf32>
    %77 = vector.extract_strided_slice %75 {offsets = [0, 32], sizes = [8, 32], strides = [1, 1]} : vector<8x128xf32> to vector<8x32xf32>
    %78 = arith.mulf %77, %41 : vector<8x32xf32>
    %79 = vector.extract_strided_slice %75 {offsets = [0, 0], sizes = [8, 32], strides = [1, 1]} : vector<8x128xf32> to vector<8x32xf32>
    %80 = vector.extract_strided_slice %76 {offsets = [0, 64], sizes = [8, 32], strides = [1, 1]} : vector<8x128xf32> to vector<8x32xf32>
    %81 = arith.mulf %79, %80 : vector<8x32xf32>
    %82 = arith.addf %78, %81 : vector<8x32xf32>
    %83 = vector.extract_strided_slice %75 {offsets = [0, 96], sizes = [8, 32], strides = [1, 1]} : vector<8x128xf32> to vector<8x32xf32>
    %84 = math.tanh %82 : vector<8x32xf32>
    %85 = arith.mulf %83, %84 : vector<8x32xf32>
    %cst_32 = arith.constant dense<0.000000e+00> : vector<8x128xf32>
    %86 = tpu.matmul %85, %17, %cst_32 {dimension_numbers = #tpu.dot_dimension_numbers<[1], [0], [0], [1], [0, 0, 1, 1], [], []>} : vector<8x32xf32>, vector<32x128xf32>, vector<8x128xf32> -> vector<8x128xf32>
    %87 = arith.addf %68, %86 : vector<8x128xf32>
    %88 = arith.negf %87 : vector<8x128xf32>
    %89 = math.exp %88 : vector<8x128xf32>
    %cst_33 = arith.constant 1.000000e+00 : f32
    %90 = vector.broadcast %cst_33 : f32 to vector<8x128xf32>
    %91 = arith.addf %90, %89 : vector<8x128xf32>
    %92 = arith.divf %90, %91 : vector<8x128xf32>
    %93 = math.tanh %87 : vector<8x128xf32>
    %94 = vector.extract_strided_slice %92 {offsets = [0, 32], sizes = [8, 32], strides = [1, 1]} : vector<8x128xf32> to vector<8x32xf32>
    %95 = arith.mulf %94, %58 : vector<8x32xf32>
    %96 = vector.extract_strided_slice %92 {offsets = [0, 0], sizes = [8, 32], strides = [1, 1]} : vector<8x128xf32> to vector<8x32xf32>
    %97 = vector.extract_strided_slice %93 {offsets = [0, 64], sizes = [8, 32], strides = [1, 1]} : vector<8x128xf32> to vector<8x32xf32>
    %98 = arith.mulf %96, %97 : vector<8x32xf32>
    %99 = arith.addf %95, %98 : vector<8x32xf32>
    %100 = vector.extract_strided_slice %92 {offsets = [0, 96], sizes = [8, 32], strides = [1, 1]} : vector<8x128xf32> to vector<8x32xf32>
    %101 = math.tanh %99 : vector<8x32xf32>
    %102 = arith.mulf %100, %101 : vector<8x32xf32>
    %c2_i32 = arith.constant 2 : i32
    %c8_i32_34 = arith.constant 8 : i32
    %103 = arith.muli %c2_i32, %c8_i32_34 : i32
    %104 = tpu.assume_multiple %103, 8 : i32
    %105 = arith.index_cast %104 : i32 to index
    %c0_35 = arith.constant 0 : index
    %106 = vector.load %arg12[%105, %c0_35] : memref<64x128xf32, #tpu.memory_space<vmem>>, vector<8x128xf32>
    %cst_36 = arith.constant dense<0.000000e+00> : vector<8x128xf32>
    %107 = tpu.matmul %102, %18, %cst_36 {dimension_numbers = #tpu.dot_dimension_numbers<[1], [0], [0], [1], [0, 0, 1, 1], [], []>} : vector<8x32xf32>, vector<32x128xf32>, vector<8x128xf32> -> vector<8x128xf32>
    %108 = vector.broadcast %19 : vector<1x128xf32> to vector<8x128xf32>
    %109 = arith.addf %107, %108 : vector<8x128xf32>
    %cst_37 = arith.constant dense<0.000000e+00> : vector<8x128xf32>
    %110 = tpu.matmul %85, %16, %cst_37 {dimension_numbers = #tpu.dot_dimension_numbers<[1], [0], [0], [1], [0, 0, 1, 1], [], []>} : vector<8x32xf32>, vector<32x128xf32>, vector<8x128xf32> -> vector<8x128xf32>
    %111 = arith.addf %106, %110 : vector<8x128xf32>
    %112 = arith.negf %111 : vector<8x128xf32>
    %113 = math.exp %112 : vector<8x128xf32>
    %cst_38 = arith.constant 1.000000e+00 : f32
    %114 = vector.broadcast %cst_38 : f32 to vector<8x128xf32>
    %115 = arith.addf %114, %113 : vector<8x128xf32>
    %116 = arith.divf %114, %115 : vector<8x128xf32>
    %117 = math.tanh %111 : vector<8x128xf32>
    %118 = vector.extract_strided_slice %116 {offsets = [0, 32], sizes = [8, 32], strides = [1, 1]} : vector<8x128xf32> to vector<8x32xf32>
    %119 = arith.mulf %118, %82 : vector<8x32xf32>
    %120 = vector.extract_strided_slice %116 {offsets = [0, 0], sizes = [8, 32], strides = [1, 1]} : vector<8x128xf32> to vector<8x32xf32>
    %121 = vector.extract_strided_slice %117 {offsets = [0, 64], sizes = [8, 32], strides = [1, 1]} : vector<8x128xf32> to vector<8x32xf32>
    %122 = arith.mulf %120, %121 : vector<8x32xf32>
    %123 = arith.addf %119, %122 : vector<8x32xf32>
    %124 = vector.extract_strided_slice %116 {offsets = [0, 96], sizes = [8, 32], strides = [1, 1]} : vector<8x128xf32> to vector<8x32xf32>
    %125 = math.tanh %123 : vector<8x32xf32>
    %126 = arith.mulf %124, %125 : vector<8x32xf32>
    %cst_39 = arith.constant dense<0.000000e+00> : vector<8x128xf32>
    %127 = tpu.matmul %126, %17, %cst_39 {dimension_numbers = #tpu.dot_dimension_numbers<[1], [0], [0], [1], [0, 0, 1, 1], [], []>} : vector<8x32xf32>, vector<32x128xf32>, vector<8x128xf32> -> vector<8x128xf32>
    %128 = arith.addf %109, %127 : vector<8x128xf32>
    %129 = arith.negf %128 : vector<8x128xf32>
    %130 = math.exp %129 : vector<8x128xf32>
    %cst_40 = arith.constant 1.000000e+00 : f32
    %131 = vector.broadcast %cst_40 : f32 to vector<8x128xf32>
    %132 = arith.addf %131, %130 : vector<8x128xf32>
    %133 = arith.divf %131, %132 : vector<8x128xf32>
    %134 = math.tanh %128 : vector<8x128xf32>
    %135 = vector.extract_strided_slice %133 {offsets = [0, 32], sizes = [8, 32], strides = [1, 1]} : vector<8x128xf32> to vector<8x32xf32>
    %136 = arith.mulf %135, %99 : vector<8x32xf32>
    %137 = vector.extract_strided_slice %133 {offsets = [0, 0], sizes = [8, 32], strides = [1, 1]} : vector<8x128xf32> to vector<8x32xf32>
    %138 = vector.extract_strided_slice %134 {offsets = [0, 64], sizes = [8, 32], strides = [1, 1]} : vector<8x128xf32> to vector<8x32xf32>
    %139 = arith.mulf %137, %138 : vector<8x32xf32>
    %140 = arith.addf %136, %139 : vector<8x32xf32>
    %141 = vector.extract_strided_slice %133 {offsets = [0, 96], sizes = [8, 32], strides = [1, 1]} : vector<8x128xf32> to vector<8x32xf32>
    %142 = math.tanh %140 : vector<8x32xf32>
    %143 = arith.mulf %141, %142 : vector<8x32xf32>
    %c3_i32 = arith.constant 3 : i32
    %c8_i32_41 = arith.constant 8 : i32
    %144 = arith.muli %c3_i32, %c8_i32_41 : i32
    %145 = tpu.assume_multiple %144, 8 : i32
    %146 = arith.index_cast %145 : i32 to index
    %c0_42 = arith.constant 0 : index
    %147 = vector.load %arg12[%146, %c0_42] : memref<64x128xf32, #tpu.memory_space<vmem>>, vector<8x128xf32>
    %cst_43 = arith.constant dense<0.000000e+00> : vector<8x128xf32>
    %148 = tpu.matmul %143, %18, %cst_43 {dimension_numbers = #tpu.dot_dimension_numbers<[1], [0], [0], [1], [0, 0, 1, 1], [], []>} : vector<8x32xf32>, vector<32x128xf32>, vector<8x128xf32> -> vector<8x128xf32>
    %149 = vector.broadcast %19 : vector<1x128xf32> to vector<8x128xf32>
    %150 = arith.addf %148, %149 : vector<8x128xf32>
    %cst_44 = arith.constant dense<0.000000e+00> : vector<8x128xf32>
    %151 = tpu.matmul %126, %16, %cst_44 {dimension_numbers = #tpu.dot_dimension_numbers<[1], [0], [0], [1], [0, 0, 1, 1], [], []>} : vector<8x32xf32>, vector<32x128xf32>, vector<8x128xf32> -> vector<8x128xf32>
    %152 = arith.addf %147, %151 : vector<8x128xf32>
    %153 = arith.negf %152 : vector<8x128xf32>
    %154 = math.exp %153 : vector<8x128xf32>
    %cst_45 = arith.constant 1.000000e+00 : f32
    %155 = vector.broadcast %cst_45 : f32 to vector<8x128xf32>
    %156 = arith.addf %155, %154 : vector<8x128xf32>
    %157 = arith.divf %155, %156 : vector<8x128xf32>
    %158 = math.tanh %152 : vector<8x128xf32>
    %159 = vector.extract_strided_slice %157 {offsets = [0, 32], sizes = [8, 32], strides = [1, 1]} : vector<8x128xf32> to vector<8x32xf32>
    %160 = arith.mulf %159, %123 : vector<8x32xf32>
    %161 = vector.extract_strided_slice %157 {offsets = [0, 0], sizes = [8, 32], strides = [1, 1]} : vector<8x128xf32> to vector<8x32xf32>
    %162 = vector.extract_strided_slice %158 {offsets = [0, 64], sizes = [8, 32], strides = [1, 1]} : vector<8x128xf32> to vector<8x32xf32>
    %163 = arith.mulf %161, %162 : vector<8x32xf32>
    %164 = arith.addf %160, %163 : vector<8x32xf32>
    %165 = vector.extract_strided_slice %157 {offsets = [0, 96], sizes = [8, 32], strides = [1, 1]} : vector<8x128xf32> to vector<8x32xf32>
    %166 = math.tanh %164 : vector<8x32xf32>
    %167 = arith.mulf %165, %166 : vector<8x32xf32>
    %cst_46 = arith.constant dense<0.000000e+00> : vector<8x128xf32>
    %168 = tpu.matmul %167, %17, %cst_46 {dimension_numbers = #tpu.dot_dimension_numbers<[1], [0], [0], [1], [0, 0, 1, 1], [], []>} : vector<8x32xf32>, vector<32x128xf32>, vector<8x128xf32> -> vector<8x128xf32>
    %169 = arith.addf %150, %168 : vector<8x128xf32>
    %170 = arith.negf %169 : vector<8x128xf32>
    %171 = math.exp %170 : vector<8x128xf32>
    %cst_47 = arith.constant 1.000000e+00 : f32
    %172 = vector.broadcast %cst_47 : f32 to vector<8x128xf32>
    %173 = arith.addf %172, %171 : vector<8x128xf32>
    %174 = arith.divf %172, %173 : vector<8x128xf32>
    %175 = math.tanh %169 : vector<8x128xf32>
    %176 = vector.extract_strided_slice %174 {offsets = [0, 32], sizes = [8, 32], strides = [1, 1]} : vector<8x128xf32> to vector<8x32xf32>
    %177 = arith.mulf %176, %140 : vector<8x32xf32>
    %178 = vector.extract_strided_slice %174 {offsets = [0, 0], sizes = [8, 32], strides = [1, 1]} : vector<8x128xf32> to vector<8x32xf32>
    %179 = vector.extract_strided_slice %175 {offsets = [0, 64], sizes = [8, 32], strides = [1, 1]} : vector<8x128xf32> to vector<8x32xf32>
    %180 = arith.mulf %178, %179 : vector<8x32xf32>
    %181 = arith.addf %177, %180 : vector<8x32xf32>
    %182 = vector.extract_strided_slice %174 {offsets = [0, 96], sizes = [8, 32], strides = [1, 1]} : vector<8x128xf32> to vector<8x32xf32>
    %183 = math.tanh %181 : vector<8x32xf32>
    %184 = arith.mulf %182, %183 : vector<8x32xf32>
    %c4_i32 = arith.constant 4 : i32
    %c8_i32_48 = arith.constant 8 : i32
    %185 = arith.muli %c4_i32, %c8_i32_48 : i32
    %186 = tpu.assume_multiple %185, 8 : i32
    %187 = arith.index_cast %186 : i32 to index
    %c0_49 = arith.constant 0 : index
    %188 = vector.load %arg12[%187, %c0_49] : memref<64x128xf32, #tpu.memory_space<vmem>>, vector<8x128xf32>
    %cst_50 = arith.constant dense<0.000000e+00> : vector<8x128xf32>
    %189 = tpu.matmul %184, %18, %cst_50 {dimension_numbers = #tpu.dot_dimension_numbers<[1], [0], [0], [1], [0, 0, 1, 1], [], []>} : vector<8x32xf32>, vector<32x128xf32>, vector<8x128xf32> -> vector<8x128xf32>
    %190 = vector.broadcast %19 : vector<1x128xf32> to vector<8x128xf32>
    %191 = arith.addf %189, %190 : vector<8x128xf32>
    %cst_51 = arith.constant dense<0.000000e+00> : vector<8x128xf32>
    %192 = tpu.matmul %167, %16, %cst_51 {dimension_numbers = #tpu.dot_dimension_numbers<[1], [0], [0], [1], [0, 0, 1, 1], [], []>} : vector<8x32xf32>, vector<32x128xf32>, vector<8x128xf32> -> vector<8x128xf32>
    %193 = arith.addf %188, %192 : vector<8x128xf32>
    %194 = arith.negf %193 : vector<8x128xf32>
    %195 = math.exp %194 : vector<8x128xf32>
    %cst_52 = arith.constant 1.000000e+00 : f32
    %196 = vector.broadcast %cst_52 : f32 to vector<8x128xf32>
    %197 = arith.addf %196, %195 : vector<8x128xf32>
    %198 = arith.divf %196, %197 : vector<8x128xf32>
    %199 = math.tanh %193 : vector<8x128xf32>
    %200 = vector.extract_strided_slice %198 {offsets = [0, 32], sizes = [8, 32], strides = [1, 1]} : vector<8x128xf32> to vector<8x32xf32>
    %201 = arith.mulf %200, %164 : vector<8x32xf32>
    %202 = vector.extract_strided_slice %198 {offsets = [0, 0], sizes = [8, 32], strides = [1, 1]} : vector<8x128xf32> to vector<8x32xf32>
    %203 = vector.extract_strided_slice %199 {offsets = [0, 64], sizes = [8, 32], strides = [1, 1]} : vector<8x128xf32> to vector<8x32xf32>
    %204 = arith.mulf %202, %203 : vector<8x32xf32>
    %205 = arith.addf %201, %204 : vector<8x32xf32>
    %206 = vector.extract_strided_slice %198 {offsets = [0, 96], sizes = [8, 32], strides = [1, 1]} : vector<8x128xf32> to vector<8x32xf32>
    %207 = math.tanh %205 : vector<8x32xf32>
    %208 = arith.mulf %206, %207 : vector<8x32xf32>
    %cst_53 = arith.constant dense<0.000000e+00> : vector<8x128xf32>
    %209 = tpu.matmul %208, %17, %cst_53 {dimension_numbers = #tpu.dot_dimension_numbers<[1], [0], [0], [1], [0, 0, 1, 1], [], []>} : vector<8x32xf32>, vector<32x128xf32>, vector<8x128xf32> -> vector<8x128xf32>
    %210 = arith.addf %191, %209 : vector<8x128xf32>
    %211 = arith.negf %210 : vector<8x128xf32>
    %212 = math.exp %211 : vector<8x128xf32>
    %cst_54 = arith.constant 1.000000e+00 : f32
    %213 = vector.broadcast %cst_54 : f32 to vector<8x128xf32>
    %214 = arith.addf %213, %212 : vector<8x128xf32>
    %215 = arith.divf %213, %214 : vector<8x128xf32>
    %216 = math.tanh %210 : vector<8x128xf32>
    %217 = vector.extract_strided_slice %215 {offsets = [0, 32], sizes = [8, 32], strides = [1, 1]} : vector<8x128xf32> to vector<8x32xf32>
    %218 = arith.mulf %217, %181 : vector<8x32xf32>
    %219 = vector.extract_strided_slice %215 {offsets = [0, 0], sizes = [8, 32], strides = [1, 1]} : vector<8x128xf32> to vector<8x32xf32>
    %220 = vector.extract_strided_slice %216 {offsets = [0, 64], sizes = [8, 32], strides = [1, 1]} : vector<8x128xf32> to vector<8x32xf32>
    %221 = arith.mulf %219, %220 : vector<8x32xf32>
    %222 = arith.addf %218, %221 : vector<8x32xf32>
    %223 = vector.extract_strided_slice %215 {offsets = [0, 96], sizes = [8, 32], strides = [1, 1]} : vector<8x128xf32> to vector<8x32xf32>
    %224 = math.tanh %222 : vector<8x32xf32>
    %225 = arith.mulf %223, %224 : vector<8x32xf32>
    %c5_i32 = arith.constant 5 : i32
    %c8_i32_55 = arith.constant 8 : i32
    %226 = arith.muli %c5_i32, %c8_i32_55 : i32
    %227 = tpu.assume_multiple %226, 8 : i32
    %228 = arith.index_cast %227 : i32 to index
    %c0_56 = arith.constant 0 : index
    %229 = vector.load %arg12[%228, %c0_56] : memref<64x128xf32, #tpu.memory_space<vmem>>, vector<8x128xf32>
    %cst_57 = arith.constant dense<0.000000e+00> : vector<8x128xf32>
    %230 = tpu.matmul %225, %18, %cst_57 {dimension_numbers = #tpu.dot_dimension_numbers<[1], [0], [0], [1], [0, 0, 1, 1], [], []>} : vector<8x32xf32>, vector<32x128xf32>, vector<8x128xf32> -> vector<8x128xf32>
    %231 = vector.broadcast %19 : vector<1x128xf32> to vector<8x128xf32>
    %232 = arith.addf %230, %231 : vector<8x128xf32>
    %cst_58 = arith.constant dense<0.000000e+00> : vector<8x128xf32>
    %233 = tpu.matmul %208, %16, %cst_58 {dimension_numbers = #tpu.dot_dimension_numbers<[1], [0], [0], [1], [0, 0, 1, 1], [], []>} : vector<8x32xf32>, vector<32x128xf32>, vector<8x128xf32> -> vector<8x128xf32>
    %234 = arith.addf %229, %233 : vector<8x128xf32>
    %235 = arith.negf %234 : vector<8x128xf32>
    %236 = math.exp %235 : vector<8x128xf32>
    %cst_59 = arith.constant 1.000000e+00 : f32
    %237 = vector.broadcast %cst_59 : f32 to vector<8x128xf32>
    %238 = arith.addf %237, %236 : vector<8x128xf32>
    %239 = arith.divf %237, %238 : vector<8x128xf32>
    %240 = math.tanh %234 : vector<8x128xf32>
    %241 = vector.extract_strided_slice %239 {offsets = [0, 32], sizes = [8, 32], strides = [1, 1]} : vector<8x128xf32> to vector<8x32xf32>
    %242 = arith.mulf %241, %205 : vector<8x32xf32>
    %243 = vector.extract_strided_slice %239 {offsets = [0, 0], sizes = [8, 32], strides = [1, 1]} : vector<8x128xf32> to vector<8x32xf32>
    %244 = vector.extract_strided_slice %240 {offsets = [0, 64], sizes = [8, 32], strides = [1, 1]} : vector<8x128xf32> to vector<8x32xf32>
    %245 = arith.mulf %243, %244 : vector<8x32xf32>
    %246 = arith.addf %242, %245 : vector<8x32xf32>
    %247 = vector.extract_strided_slice %239 {offsets = [0, 96], sizes = [8, 32], strides = [1, 1]} : vector<8x128xf32> to vector<8x32xf32>
    %248 = math.tanh %246 : vector<8x32xf32>
    %249 = arith.mulf %247, %248 : vector<8x32xf32>
    %cst_60 = arith.constant dense<0.000000e+00> : vector<8x128xf32>
    %250 = tpu.matmul %249, %17, %cst_60 {dimension_numbers = #tpu.dot_dimension_numbers<[1], [0], [0], [1], [0, 0, 1, 1], [], []>} : vector<8x32xf32>, vector<32x128xf32>, vector<8x128xf32> -> vector<8x128xf32>
    %251 = arith.addf %232, %250 : vector<8x128xf32>
    %252 = arith.negf %251 : vector<8x128xf32>
    %253 = math.exp %252 : vector<8x128xf32>
    %cst_61 = arith.constant 1.000000e+00 : f32
    %254 = vector.broadcast %cst_61 : f32 to vector<8x128xf32>
    %255 = arith.addf %254, %253 : vector<8x128xf32>
    %256 = arith.divf %254, %255 : vector<8x128xf32>
    %257 = math.tanh %251 : vector<8x128xf32>
    %258 = vector.extract_strided_slice %256 {offsets = [0, 32], sizes = [8, 32], strides = [1, 1]} : vector<8x128xf32> to vector<8x32xf32>
    %259 = arith.mulf %258, %222 : vector<8x32xf32>
    %260 = vector.extract_strided_slice %256 {offsets = [0, 0], sizes = [8, 32], strides = [1, 1]} : vector<8x128xf32> to vector<8x32xf32>
    %261 = vector.extract_strided_slice %257 {offsets = [0, 64], sizes = [8, 32], strides = [1, 1]} : vector<8x128xf32> to vector<8x32xf32>
    %262 = arith.mulf %260, %261 : vector<8x32xf32>
    %263 = arith.addf %259, %262 : vector<8x32xf32>
    %264 = vector.extract_strided_slice %256 {offsets = [0, 96], sizes = [8, 32], strides = [1, 1]} : vector<8x128xf32> to vector<8x32xf32>
    %265 = math.tanh %263 : vector<8x32xf32>
    %266 = arith.mulf %264, %265 : vector<8x32xf32>
    %c6_i32 = arith.constant 6 : i32
    %c8_i32_62 = arith.constant 8 : i32
    %267 = arith.muli %c6_i32, %c8_i32_62 : i32
    %268 = tpu.assume_multiple %267, 8 : i32
    %269 = arith.index_cast %268 : i32 to index
    %c0_63 = arith.constant 0 : index
    %270 = vector.load %arg12[%269, %c0_63] : memref<64x128xf32, #tpu.memory_space<vmem>>, vector<8x128xf32>
    %cst_64 = arith.constant dense<0.000000e+00> : vector<8x128xf32>
    %271 = tpu.matmul %266, %18, %cst_64 {dimension_numbers = #tpu.dot_dimension_numbers<[1], [0], [0], [1], [0, 0, 1, 1], [], []>} : vector<8x32xf32>, vector<32x128xf32>, vector<8x128xf32> -> vector<8x128xf32>
    %272 = vector.broadcast %19 : vector<1x128xf32> to vector<8x128xf32>
    %273 = arith.addf %271, %272 : vector<8x128xf32>
    %cst_65 = arith.constant dense<0.000000e+00> : vector<8x128xf32>
    %274 = tpu.matmul %249, %16, %cst_65 {dimension_numbers = #tpu.dot_dimension_numbers<[1], [0], [0], [1], [0, 0, 1, 1], [], []>} : vector<8x32xf32>, vector<32x128xf32>, vector<8x128xf32> -> vector<8x128xf32>
    %275 = arith.addf %270, %274 : vector<8x128xf32>
    %276 = arith.negf %275 : vector<8x128xf32>
    %277 = math.exp %276 : vector<8x128xf32>
    %cst_66 = arith.constant 1.000000e+00 : f32
    %278 = vector.broadcast %cst_66 : f32 to vector<8x128xf32>
    %279 = arith.addf %278, %277 : vector<8x128xf32>
    %280 = arith.divf %278, %279 : vector<8x128xf32>
    %281 = math.tanh %275 : vector<8x128xf32>
    %282 = vector.extract_strided_slice %280 {offsets = [0, 32], sizes = [8, 32], strides = [1, 1]} : vector<8x128xf32> to vector<8x32xf32>
    %283 = arith.mulf %282, %246 : vector<8x32xf32>
    %284 = vector.extract_strided_slice %280 {offsets = [0, 0], sizes = [8, 32], strides = [1, 1]} : vector<8x128xf32> to vector<8x32xf32>
    %285 = vector.extract_strided_slice %281 {offsets = [0, 64], sizes = [8, 32], strides = [1, 1]} : vector<8x128xf32> to vector<8x32xf32>
    %286 = arith.mulf %284, %285 : vector<8x32xf32>
    %287 = arith.addf %283, %286 : vector<8x32xf32>
    %288 = vector.extract_strided_slice %280 {offsets = [0, 96], sizes = [8, 32], strides = [1, 1]} : vector<8x128xf32> to vector<8x32xf32>
    %289 = math.tanh %287 : vector<8x32xf32>
    %290 = arith.mulf %288, %289 : vector<8x32xf32>
    %cst_67 = arith.constant dense<0.000000e+00> : vector<8x128xf32>
    %291 = tpu.matmul %290, %17, %cst_67 {dimension_numbers = #tpu.dot_dimension_numbers<[1], [0], [0], [1], [0, 0, 1, 1], [], []>} : vector<8x32xf32>, vector<32x128xf32>, vector<8x128xf32> -> vector<8x128xf32>
    %292 = arith.addf %273, %291 : vector<8x128xf32>
    %293 = arith.negf %292 : vector<8x128xf32>
    %294 = math.exp %293 : vector<8x128xf32>
    %cst_68 = arith.constant 1.000000e+00 : f32
    %295 = vector.broadcast %cst_68 : f32 to vector<8x128xf32>
    %296 = arith.addf %295, %294 : vector<8x128xf32>
    %297 = arith.divf %295, %296 : vector<8x128xf32>
    %298 = math.tanh %292 : vector<8x128xf32>
    %299 = vector.extract_strided_slice %297 {offsets = [0, 32], sizes = [8, 32], strides = [1, 1]} : vector<8x128xf32> to vector<8x32xf32>
    %300 = arith.mulf %299, %263 : vector<8x32xf32>
    %301 = vector.extract_strided_slice %297 {offsets = [0, 0], sizes = [8, 32], strides = [1, 1]} : vector<8x128xf32> to vector<8x32xf32>
    %302 = vector.extract_strided_slice %298 {offsets = [0, 64], sizes = [8, 32], strides = [1, 1]} : vector<8x128xf32> to vector<8x32xf32>
    %303 = arith.mulf %301, %302 : vector<8x32xf32>
    %304 = arith.addf %300, %303 : vector<8x32xf32>
    %305 = vector.extract_strided_slice %297 {offsets = [0, 96], sizes = [8, 32], strides = [1, 1]} : vector<8x128xf32> to vector<8x32xf32>
    %306 = math.tanh %304 : vector<8x32xf32>
    %307 = arith.mulf %305, %306 : vector<8x32xf32>
    %c7_i32 = arith.constant 7 : i32
    %c8_i32_69 = arith.constant 8 : i32
    %308 = arith.muli %c7_i32, %c8_i32_69 : i32
    %309 = tpu.assume_multiple %308, 8 : i32
    %310 = arith.index_cast %309 : i32 to index
    %c0_70 = arith.constant 0 : index
    %311 = vector.load %arg12[%310, %c0_70] : memref<64x128xf32, #tpu.memory_space<vmem>>, vector<8x128xf32>
    %cst_71 = arith.constant dense<0.000000e+00> : vector<8x128xf32>
    %312 = tpu.matmul %307, %18, %cst_71 {dimension_numbers = #tpu.dot_dimension_numbers<[1], [0], [0], [1], [0, 0, 1, 1], [], []>} : vector<8x32xf32>, vector<32x128xf32>, vector<8x128xf32> -> vector<8x128xf32>
    %313 = vector.broadcast %19 : vector<1x128xf32> to vector<8x128xf32>
    %314 = arith.addf %312, %313 : vector<8x128xf32>
    %cst_72 = arith.constant dense<0.000000e+00> : vector<8x128xf32>
    %315 = tpu.matmul %290, %16, %cst_72 {dimension_numbers = #tpu.dot_dimension_numbers<[1], [0], [0], [1], [0, 0, 1, 1], [], []>} : vector<8x32xf32>, vector<32x128xf32>, vector<8x128xf32> -> vector<8x128xf32>
    %316 = arith.addf %311, %315 : vector<8x128xf32>
    %317 = arith.negf %316 : vector<8x128xf32>
    %318 = math.exp %317 : vector<8x128xf32>
    %cst_73 = arith.constant 1.000000e+00 : f32
    %319 = vector.broadcast %cst_73 : f32 to vector<8x128xf32>
    %320 = arith.addf %319, %318 : vector<8x128xf32>
    %321 = arith.divf %319, %320 : vector<8x128xf32>
    %322 = math.tanh %316 : vector<8x128xf32>
    %323 = vector.extract_strided_slice %321 {offsets = [0, 32], sizes = [8, 32], strides = [1, 1]} : vector<8x128xf32> to vector<8x32xf32>
    %324 = arith.mulf %323, %287 : vector<8x32xf32>
    %325 = vector.extract_strided_slice %321 {offsets = [0, 0], sizes = [8, 32], strides = [1, 1]} : vector<8x128xf32> to vector<8x32xf32>
    %326 = vector.extract_strided_slice %322 {offsets = [0, 64], sizes = [8, 32], strides = [1, 1]} : vector<8x128xf32> to vector<8x32xf32>
    %327 = arith.mulf %325, %326 : vector<8x32xf32>
    %328 = arith.addf %324, %327 : vector<8x32xf32>
    %329 = vector.extract_strided_slice %321 {offsets = [0, 96], sizes = [8, 32], strides = [1, 1]} : vector<8x128xf32> to vector<8x32xf32>
    %330 = math.tanh %328 : vector<8x32xf32>
    %331 = arith.mulf %329, %330 : vector<8x32xf32>
    %cst_74 = arith.constant dense<0.000000e+00> : vector<8x128xf32>
    %332 = tpu.matmul %331, %17, %cst_74 {dimension_numbers = #tpu.dot_dimension_numbers<[1], [0], [0], [1], [0, 0, 1, 1], [], []>} : vector<8x32xf32>, vector<32x128xf32>, vector<8x128xf32> -> vector<8x128xf32>
    %333 = arith.addf %314, %332 : vector<8x128xf32>
    %334 = arith.negf %333 : vector<8x128xf32>
    %335 = math.exp %334 : vector<8x128xf32>
    %cst_75 = arith.constant 1.000000e+00 : f32
    %336 = vector.broadcast %cst_75 : f32 to vector<8x128xf32>
    %337 = arith.addf %336, %335 : vector<8x128xf32>
    %338 = arith.divf %336, %337 : vector<8x128xf32>
    %339 = math.tanh %333 : vector<8x128xf32>
    %340 = vector.extract_strided_slice %338 {offsets = [0, 32], sizes = [8, 32], strides = [1, 1]} : vector<8x128xf32> to vector<8x32xf32>
    %341 = arith.mulf %340, %304 : vector<8x32xf32>
    %342 = vector.extract_strided_slice %338 {offsets = [0, 0], sizes = [8, 32], strides = [1, 1]} : vector<8x128xf32> to vector<8x32xf32>
    %343 = vector.extract_strided_slice %339 {offsets = [0, 64], sizes = [8, 32], strides = [1, 1]} : vector<8x128xf32> to vector<8x32xf32>
    %344 = arith.mulf %342, %343 : vector<8x32xf32>
    %345 = arith.addf %341, %344 : vector<8x32xf32>
    %346 = vector.extract_strided_slice %338 {offsets = [0, 96], sizes = [8, 32], strides = [1, 1]} : vector<8x128xf32> to vector<8x32xf32>
    %347 = math.tanh %345 : vector<8x32xf32>
    %348 = arith.mulf %346, %347 : vector<8x32xf32>
    %c8_i32_76 = arith.constant 8 : i32
    %c0_77 = arith.constant 0 : index
    %c0_78 = arith.constant 0 : index
    %349 = vector.load %arg9[%c0_77, %c0_78] : memref<1x64xf32, #tpu.memory_space<vmem>>, vector<1x64xf32>
    %350 = vector.extract_strided_slice %349 {offsets = [0, 0], sizes = [1, 32], strides = [1, 1]} : vector<1x64xf32> to vector<1x32xf32>
    %351 = vector.broadcast %350 : vector<1x32xf32> to vector<8x32xf32>
    %352 = arith.mulf %331, %351 : vector<8x32xf32>
    %cst_79 = arith.constant dense<0.000000e+00> : vector<8xf32>
    %353 = vector.multi_reduction <add>, %352, %cst_79 [1] : vector<8x32xf32> to vector<8xf32>
    %354 = vector.shape_cast %353 : vector<8xf32> to vector<8x1xf32>
    %355 = vector.extract_strided_slice %349 {offsets = [0, 32], sizes = [1, 32], strides = [1, 1]} : vector<1x64xf32> to vector<1x32xf32>
    %356 = vector.broadcast %355 : vector<1x32xf32> to vector<8x32xf32>
    %357 = arith.mulf %348, %356 : vector<8x32xf32>
    %cst_80 = arith.constant dense<0.000000e+00> : vector<8xf32>
    %358 = vector.multi_reduction <add>, %357, %cst_80 [1] : vector<8x32xf32> to vector<8xf32>
    %359 = vector.shape_cast %358 : vector<8xf32> to vector<8x1xf32>
    %360 = arith.addf %354, %359 : vector<8x1xf32>
    %c0_81 = arith.constant 0 : index
    %c0_82 = arith.constant 0 : index
    %361 = vector.load %arg10[%c0_81, %c0_82] : memref<1x1xf32, #tpu.memory_space<vmem>>, vector<1x1xf32>
    %362 = vector.broadcast %361 : vector<1x1xf32> to vector<8x1xf32>
    %363 = arith.addf %360, %362 : vector<8x1xf32>
    %c0_83 = arith.constant 0 : index
    %c0_84 = arith.constant 0 : index
    %364 = vector.load %arg11[%c0_83, %c0_84] : memref<8x1xf32, #tpu.memory_space<vmem>>, vector<8x1xf32>
    tpu.vector_store %arg11[%c0_83, %c0_84], %363 {strides = array<i32>} : memref<8x1xf32, #tpu.memory_space<vmem>>, vector<8x1xf32>,
    return
  }
}

</mosaic_0001>

<bundles_post_ra>
// kernel: lstm_model_forward.1
= control target key start
LH: loop header
LB: loop body
LE: loop exit
PB: predicated region body
PF: predicated region fallthrough
CT: control target
= control target key end

     0   :  { %v3295_v0 = vmov 0   ;;  %v3296_v13 = vmov 0.0|0.0   ;;  %vm137_vm0 = vcmask 261120   ;;  %vm3297_vm1 = vmmov 0   ;;  %s3299_s16 = smov 64   ;;  %s3301_s27 = smov 96   ;;  %s3820_s0 = inlined_call_operand.vmem [shape: f32[64,1], index: 0, kind: input, shape index: {}]   ;;  %s3821_s3 = inlined_call_operand.vmem [shape: f32[32,128], index: 3, kind: input, shape index: {}]   ;;  %s3822_s1 = inlined_call_operand.vmem [shape: f32[1,32], index: 1, kind: input, shape index: {}]   ;;  %s3823_s2 = inlined_call_operand.vmem [shape: f32[1,32], index: 2, kind: input, shape index: {}]   ;;  %s3824_s7 = inlined_call_operand.vmem [shape: f32[32,128], index: 7, kind: input, shape index: {}]   ;;  %s3825_s4 = inlined_call_operand.vmem [shape: f32[32,128], index: 4, kind: input, shape index: {}]   ;;  %s3826_s5 = inlined_call_operand.vmem [shape: f32[1,128], index: 5, kind: input, shape index: {}]   ;;  %s3827_s6 = inlined_call_operand.vmem [shape: f32[32,128], index: 6, kind: input, shape index: {}]   ;;  %s3828_s8 = inlined_call_operand.vmem [shape: f32[1,128], index: 8, kind: input, shape index: {}]   ;;  %s3829_s9 = inlined_call_operand.vmem [shape: f32[1,64], index: 9, kind: input, shape index: {}]   ;;  %s3830_s10 = inlined_call_operand.<no memory space> [shape: f32[1,1], index: 10, kind: input, shape index: {}]   ;;  %s3831_s11 = inlined_call_operand.vmem [shape: f32[8,1], index: 11, kind: output, shape index: {}]  }
   0x1   :  { %3166 = vset.pattern.permute.xlu1 %v3295_v0  ;;  %3165 = vset.pattern.permute.xlu0 %v3295_v0  ;;  %v46_v1 = vld [vmem:[%s3820_s0 + $0x30] sm:$0xff]  ;;  %v44_v2 = vld [vmem:[%s3820_s0 + $0x20] sm:$0xff]  ;;  %v47_v3 = vld [vmem:[%s3820_s0 + $0x38] sm:$0xff]  ;;  %v3298_v49 = vmov 0.0   ;;  %vm2504_vm2 = vcmask 7168  }
   0x2   :  { %81 = vperm.xlu1 %3166, %v46_v1   ;;  %71 = vperm.xlu0 %3165, %v44_v2   ;;  %v45_v4 = vld [vmem:[%s3820_s0 + $0x28] sm:$0xff]  ;;  %v126_v5 = vld [vmem:[%s3821_s3] sm:$0xff]  ;;  %v128_v7 = vld [vmem:[%s3821_s3 + $0x10] sm:$0xff] }
   0x3   :  { %v127_v6 = vld [vmem:[%s3821_s3 + $0x8] sm:$0xff]  ;;  %v129_v8 = vld [vmem:[%s3821_s3 + $0x18] sm:$0xff]  ;;  %v40_v12 = vld [vmem:[%s3820_s0] sm:$0xff] }
   0x4   :  { %v2978_v9 = vpack.c.bf16 %v127_v6, %v126_v5  ;;  %v2982_v10 = vpack.c.bf16 %v129_v8, %v128_v7  ;;  %v41_v11 = vld [vmem:[%s3820_s0 + $0x8] sm:$0xff]  ;;  %v3397_v14 = vld [vmem:[%s3822_s1] ss:$0 sm:$0xff]  ;;  %v285_v38 = vld [vmem:[%s3824_s7 + $0x10] sm:$0xff] }
   0x5   :  { %v3402_v15 = vld [vmem:[%s3823_s2] ss:$0 sm:$0xff]  ;;  %v284_v28 = vld [vmem:[%s3824_s7 + $0x8] sm:$0xff]  ;;  %v286_v39 = vld [vmem:[%s3824_s7 + $0x18] sm:$0xff] }
   0x6   :  { %86 = vperm.xlu1 %3166, %v47_v3   ;;  %76 = vperm.xlu0 %3165, %v45_v4   ;;  %v283_v27 = vld [vmem:[%s3824_s7] sm:$0xff]  ;;  %v3434_v42 = vpack.c.bf16 %v286_v39, %v285_v38  ;;  %v276_v47 = vld [vmem:[%s3825_s4 + $0x8] sm:$0xff]  ;;  %v277_v50 = vld [vmem:[%s3825_s4 + $0x10] sm:$0xff] }
   0x7   :  { %3130 = vmatprep.subr.bf16.mxu1 %v2978_v9  ;;  %2979 = vmatprep.subr.bf16.mxu0 %v2978_v9  ;;  %v3418_v33 = vpack.c.bf16 %v284_v28, %v283_v27  ;;  %v275_v46 = vld [vmem:[%s3825_s4] sm:$0xff]  ;;  %v278_v51 = vld [vmem:[%s3825_s4 + $0x18] sm:$0xff] }
   0x8   :  { %3132 = vmatpush3.bf16.msra.mxu1 %v2978_v9  ;;  %2981 = vmatpush3.bf16.msra.mxu0 %v2978_v9  ;;  %v3447_v48 = vpack.c.bf16 %v276_v47, %v275_v46  ;;  %v3462_v52 = vpack.c.bf16 %v278_v51, %v277_v50  ;;  %v3487_v59 = vld [vmem:[%s3826_s5] ss:$0 sm:$0xff]  ;;  %s3300_s5 = smov 32  }
   0x9   :  { %3131 = vmatprep.subr.bf16.mxu1 %v2982_v10  ;;  %2983 = vmatprep.subr.bf16.mxu0 %v2982_v10 }
   0xa   :  { %56 = vperm.xlu1 %3166, %v41_v11   ;;  %51 = vperm.xlu0 %3165, %v40_v12   ;;  %v280_v11 = vld [vmem:[%s3827_s6 + $0x8] sm:$0xff]  ;;  %v281_v12 = vld [vmem:[%s3827_s6 + $0x10] sm:$0xff] }
   0xc   :  { %3133 = vmatpush3.bf16.msra.mxu1 %v2982_v10  ;;  %2985 = vmatpush3.bf16.msra.mxu0 %v2982_v10  ;;  %v279_v10 = vld [vmem:[%s3827_s6] sm:$0xff] }
   0xd   :  { %2986 = vmatprep.subr.bf16.mxu1 %v3296_v13  ;;  %3004 = vmatprep.subr.bf16.mxu0 %v3296_v13 }
  0x81   :  { %v82_v16 = vpop.permute.xlu1 %81  ;;  %v72_v17 = vpop.permute.xlu0 %71 }
  0x82   :  { %v101_v18 = vmul.f32 %v3397_v14, %v82_v16  ;;  %v99_v19 = vmul.f32 %v3397_v14, %v72_v17  ;;  %v3504_v16 = vpack.c.bf16 %v280_v11, %v279_v10  ;;  %v282_v17 = vld [vmem:[%s3827_s6 + $0x18] sm:$0xff] }
  0x84   :  { %v114_v20 = vadd.f32 %v3402_v15, %v99_v19  ;;  %v116_v21 = vadd.f32 %v3402_v15, %v101_v18  ;;  %v3510_v18 = vpack.c.bf16 %v282_v17, %v281_v12 }
  0x85   :  { %v87_v22 = vpop.permute.xlu1 %86  ;;  %v77_v23 = vpop.permute.xlu0 %76 }
  0x86   :  { %v102_v24 = vmul.f32 %v3397_v14, %v87_v22  ;;  %v100_v25 = vmul.f32 %v3397_v14, %v77_v23  ;;  %v122_v26 = vmax.f32 %v114_v20, 0.0  ;;  %v124_v30 = vmax.f32 %v116_v21, 0.0  ;;  %v3527_v23 = vld [vmem:[%s3828_s8] ss:$0 sm:$0xff] }
  0x88   :  { %v115_v29 = vadd.f32 %v3402_v15, %v100_v25  ;;  %2708 = vmatprep.mubr.msk.f32.mxu1 %vm137_vm0, %v122_v26  ;;  %v117_v34 = vadd.f32 %v3402_v15, %v102_v24 }
  0x89   :  { %v57_v31 = vpop.permute.xlu1 %56  ;;  %v52_v32 = vpop.permute.xlu0 %51 }
  0x8a   :  { %v123_v35 = vmax.f32 %v115_v29, 0.0  ;;  %v96_v36 = vmul.f32 %v3397_v14, %v57_v31  ;;  %v95_v37 = vmul.f32 %v3397_v14, %v52_v32  ;;  %v125_v43 = vmax.f32 %v117_v34, 0.0 }
  0x8c   :  { %v111_v40 = vadd.f32 %v3402_v15, %v96_v36  ;;  %2709 = vmatmul.mubr.msk.f32.vlgmr.msra.gmra.mrb[0].mxu1 %vm137_vm0, %v123_v35  ;;  %v110_v41 = vadd.f32 %v3402_v15, %v95_v37  ;;  %v42_v35 = vld [vmem:[%s3820_s0 + $0x10] sm:$0xff] }
  0x8d   :  { %2988 = vmatpush3.bf16.msra.mxu1 %v3418_v33  ;;  %2711 = vmatprep.mubr.msk.f32.mxu1 %vm137_vm0, %v124_v30 }
  0x8e   :  { %v119_v44 = vmax.f32 %v111_v40, 0.0  ;;  %2989 = vmatprep.subr.bf16.mxu1 %v3296_v13  ;;  %v118_v45 = vmax.f32 %v110_v41, 0.0  ;;  %v43_v40 = vld [vmem:[%s3820_s0 + $0x18] sm:$0xff] }
  0x90   :  { %2702 = vmatprep.mubr.msk.f32.mxu0 %vm137_vm0, %v118_v45  ;;  %2712 = vmatmul.mubr.msk.f32.gmra.mrb[2].mxu1 %vm137_vm0, %v125_v43 }
  0x91   :  { %2991 = vmatpush3.bf16.msra.mxu1 %v3434_v42  ;;  %2703 = vmatmul.mubr.msk.f32.vlgmr.msra.gmra.mrb[0].mxu0 %vm137_vm0, %v119_v44 }
  0x92   :  { %2722 = vmatprep.mubr.msk.f32.mxu1 %vm3297_vm1, %v3298_v49  ;;  %2992 = vmatprep.subr.bf16.mxu1 %v3296_v13 }
  0x93   :  { %3006 = vmatpush3.bf16.msra.mxu0 %v3418_v33 }
  0x94   :  { %2723 = vmatmul.mubr.f32.vlgmr.msra.gmra.mrb[4].mxu1 %v3298_v49  ;;  %3007 = vmatprep.subr.bf16.mxu0 %v3296_v13 }
  0x95   :  { %2994 = vmatpush3.bf16.msra.mxu1 %v3447_v48  ;;  %2733 = vmatprep.mubr.msk.f32.mxu1 %vm3297_vm1, %v3298_v49 }
  0x96   :  { %2995 = vmatprep.subr.bf16.mxu1 %v3296_v13 }
  0x97   :  { %3009 = vmatpush3.bf16.msra.mxu0 %v3434_v42 }
  0x98   :  { %3010 = vmatprep.subr.bf16.mxu0 %v3296_v13 }
  0x99   :  { %2997 = vmatpush3.bf16.msra.mxu1 %v3462_v52 }
  0x9a   :  { %2998 = vmatprep.subr.bf16.mxu1 %v3296_v13 }
  0x9c   :  { %2734 = vmatmul.mubr.f32.vlgmr.msra.gmra.mrb[6].mxu1 %v3298_v49 }
  0x9d   :  { %2744 = vmatprep.mubr.msk.f32.mxu1 %vm3297_vm1, %v3298_v49  ;;  %3000 = vmatpush3.bf16.msra.mxu1 %v3504_v16 }
  0x9e   :  { %3001 = vmatprep.subr.bf16.mxu1 %v3296_v13 }
  0xa1   :  { %3003 = vmatpush3.bf16.msra.mxu1 %v3510_v18 }
  0xa2   :  { %3022 = vmatprep.subr.bf16.mxu1 %v3296_v13 }
 0x15f   :  { %v3474_v53 = vpop.f32.mrb[0].mxu1 }
 0x160   :  { %v3476_v54 = vpop.f32.mrb[1].mxu1 }
 0x163   :  { %v3478_v55 = vpop.f32.mrb[2].mxu1 }
 0x164   :  { %v3480_v56 = vpop.f32.mrb[0].mxu0  ;;  %v3482_v57 = vpop.f32.mrb[3].mxu1 }
 0x165   :  { %v228_v58 = vpop.f32.mrb[1].mxu0 }
 0x166   :  { %v229_v60 = vadd.f32 %v3487_v59, %v228_v58 }
 0x16f   :  { %v434_v61 = vpop.f32.mrb[6].mxu1 }
 0x170   :  { %v438_v62 = vadd.f32 %v434_v61, %v229_v60  ;;  %v2735_v63 = vpop.f32.mrb[7].mxu1 }
 0x172   :  { %3167 = vtanh.f32 %v438_v62  ;;  %v2522_v1 = vmul.f32 -1.442695, %v438_v62  ;;  %v234_v62 = vadd.f32 %v3480_v56, %v3487_v59 }
 0x174   :  { %3169 = vpow2.f32 %v2522_v1 }
 0x17c   :  { %v3168_v0 = vpop.eup %3167 }
 0x17d   :  { %448 = vrot.lane.b32.xlu0 %v3168_v0, %s3299_s16 }
 0x17e   :  { %v3170_v2 = vpop.eup %3169 }
 0x17f   :  { %v442_v3 = vadd.f32 1.0, %v3170_v2 }
 0x181   :  { %3171 = vrcp.f32 %v442_v3 }
 0x18b   :  { %v3172_v4 = vpop.eup %3171 }
 0x18c   :  { %v446_v7 = vmul.f32 0.0, %v3172_v4 }
 0x1ef   :  { %v449_v5 = vpop.permute.xlu0 %448 }
 0x1f0   :  { %v451_v6 = vmul.f32 %v3172_v4, %v449_v5 }
 0x1f2   :  { %453 = vrot.lane.b32.xlu1 %v451_v6, %s3300_s5 }
 0x264   :  { %v454_v8 = vpop.permute.xlu1 %453 }
 0x265   :  { %v3492_v9 = vadd.f32 %v454_v8, %v446_v7 }
 0x267   :  { %3173 = vtanh.f32 %v3492_v9 }
 0x271   :  { %v3174_v19 = vpop.eup %3173 }
 0x272   :  { %459 = vrot.lane.b32.xlu0 %v3174_v19, %s3299_s16 }
 0x2e4   :  { %v460_v20 = vpop.permute.xlu0 %459 }
 0x2e5   :  { %v462_v21 = vmul.f32 %v3172_v4, %v460_v20 }
 0x2e7   :  { %464 = vrot.lane.b32.xlu1 %v462_v21, %s3300_s5 }
 0x359   :  { %v465_v22 = vpop.permute.xlu1 %464 }
 0x35a   :  { %2745 = vmatmul.mubr.msk.f32.vlgmr.msra.gmra.mrb[4].mxu1 %vm137_vm0, %v465_v22 }
 0x35b   :  { %3024 = vmatpush3.bf16.msra.mxu1 %v3418_v33  ;;  %2788 = vmatprep.mubr.msk.f32.mxu1 %vm3297_vm1, %v3298_v49 }
 0x35c   :  { %3025 = vmatprep.subr.bf16.mxu1 %v3296_v13 }
 0x35f   :  { %3027 = vmatpush3.bf16.msra.mxu1 %v3434_v42 }
 0x360   :  { %3028 = vmatprep.subr.bf16.mxu1 %v3296_v13 }
 0x42d   :  { %v534_v24 = vpop.f32.mrb[4].mxu1 }
 0x42e   :  { %v3134_v25 = vadd.f32 %v3527_v23, %v534_v24  ;;  %v2746_v26 = vpop.f32.mrb[5].mxu1 }
 0x430   :  { %3175 = vtanh.f32 %v3134_v25  ;;  %v2524_v28 = vmul.f32 -1.442695, %v3134_v25 }
 0x432   :  { %3177 = vpow2.f32 %v2524_v28 }
 0x43a   :  { %v3176_v27 = vpop.eup %3175 }
 0x43b   :  { %548 = vrot.lane.b32.xlu0 %v3176_v27, %s3299_s16 }
 0x43c   :  { %v3178_v29 = vpop.eup %3177 }
 0x43d   :  { %v542_v30 = vadd.f32 1.0, %v3178_v29 }
 0x43f   :  { %3179 = vrcp.f32 %v542_v30 }
 0x449   :  { %v3180_v31 = vpop.eup %3179 }
 0x44a   :  { %v546_v36 = vmul.f32 0.0, %v3180_v31 }
 0x4ad   :  { %v549_v32 = vpop.permute.xlu0 %548 }
 0x4ae   :  { %v551_v34 = vmul.f32 %v3180_v31, %v549_v32 }
 0x4b0   :  { %553 = vrot.lane.b32.xlu1 %v551_v34, %s3300_s5 }
 0x4b4   :  { %61 = vperm.xlu1 %3166, %v42_v35  }
 0x522   :  { %v554_v37 = vpop.permute.xlu1 %553 }
 0x523   :  { %v3535_v38 = vadd.f32 %v554_v37, %v546_v36 }
 0x525   :  { %3181 = vtanh.f32 %v3535_v38 }
 0x52f   :  { %v3182_v39 = vpop.eup %3181 }
 0x530   :  { %559 = vrot.lane.b32.xlu0 %v3182_v39, %s3299_s16 }
 0x533   :  { %v62_v41 = vpop.permute.xlu1 %61 }
 0x534   :  { %v97_v43 = vmul.f32 %v3397_v14, %v62_v41  ;;  %66 = vperm.xlu0 %3165, %v43_v40  }
 0x536   :  { %v112_v44 = vadd.f32 %v3402_v15, %v97_v43 }
 0x538   :  { %v120_v45 = vmax.f32 %v112_v44, 0.0 }
 0x53a   :  { %2705 = vmatprep.mubr.msk.f32.mxu0 %vm137_vm0, %v120_v45 }
 0x5a2   :  { %v560_v46 = vpop.permute.xlu0 %559 }
 0x5a3   :  { %v562_v47 = vmul.f32 %v3180_v31, %v560_v46 }
 0x5a5   :  { %566 = vrot.lane.b32.xlu1 %v562_v47, %s3300_s5 }
 0x5b3   :  { %v67_v50 = vpop.permute.xlu0 %66 }
 0x5b4   :  { %v98_v51 = vmul.f32 %v3397_v14, %v67_v50 }
 0x5b6   :  { %v113_v58 = vadd.f32 %v3402_v15, %v98_v51 }
 0x5b8   :  { %v121_v60 = vmax.f32 %v113_v58, 0.0 }
 0x5ba   :  { %2706 = vmatmul.mubr.msk.f32.gmra.mrb[2].mxu0 %vm137_vm0, %v121_v60 }
 0x5bb   :  { %2755 = vmatprep.mubr.msk.f32.mxu0 %vm3297_vm1, %v3298_v49 }
 0x617   :  { %v567_v61 = vpop.permute.xlu1 %566 }
 0x618   :  { %2756 = vmatmul.mubr.msk.f32.vlgmr.msra.gmra.mrb[4].mxu0 %vm137_vm0, %v567_v61 }
 0x619   :  { %3012 = vmatpush3.bf16.msra.mxu0 %v3447_v48  ;;  %2766 = vmatprep.mubr.msk.f32.mxu0 %vm3297_vm1, %v3298_v49 }
 0x61a   :  { %3013 = vmatprep.subr.bf16.mxu0 %v3296_v13 }
 0x61d   :  { %3015 = vmatpush3.bf16.msra.mxu0 %v3462_v52 }
 0x61e   :  { %3016 = vmatprep.subr.bf16.mxu0 %v3296_v13 }
 0x620   :  { %2767 = vmatmul.mubr.msk.f32.vlgmr.msra.gmra.mrb[6].mxu0 %vm137_vm0, %v465_v22 }
 0x621   :  { %3018 = vmatpush3.bf16.msra.mxu0 %v3504_v16  ;;  %2777 = vmatprep.mubr.msk.f32.mxu0 %vm3297_vm1, %v3298_v49 }
 0x622   :  { %3019 = vmatprep.subr.bf16.mxu0 %v3296_v13 }
 0x625   :  { %3021 = vmatpush3.bf16.msra.mxu0 %v3510_v18 }
 0x626   :  { %3040 = vmatprep.subr.bf16.mxu0 %v3296_v13 }
 0x68d   :  { %v3565_v14 = vpop.f32.mrb[2].mxu0 }
 0x68e   :  { %v3567_v15 = vpop.f32.mrb[3].mxu0 }
 0x6f3   :  { %v706_v63 = vpop.f32.mrb[6].mxu0 }
 0x6f4   :  { %v710_v0 = vadd.f32 %v706_v63, %v234_v62  ;;  %v2768_v1 = vpop.f32.mrb[7].mxu0 }
 0x6f6   :  { %3183 = vtanh.f32 %v710_v0  ;;  %v2527_v3 = vmul.f32 -1.442695, %v710_v0 }
 0x6f8   :  { %3185 = vpow2.f32 %v2527_v3 }
 0x700   :  { %v3184_v2 = vpop.eup %3183 }
 0x701   :  { %720 = vrot.lane.b32.xlu0 %v3184_v2, %s3299_s16 }
 0x702   :  { %v3186_v4 = vpop.eup %3185 }
 0x703   :  { %v714_v5 = vadd.f32 1.0, %v3186_v4 }
 0x705   :  { %3187 = vrcp.f32 %v714_v5 }
 0x70f   :  { %v3188_v6 = vpop.eup %3187 }
 0x710   :  { %v718_v10 = vmul.f32 %v3188_v6, %v3492_v9 }
 0x773   :  { %v721_v7 = vpop.permute.xlu0 %720 }
 0x774   :  { %v723_v8 = vmul.f32 %v3188_v6, %v721_v7 }
 0x776   :  { %725 = vrot.lane.b32.xlu1 %v723_v8, %s3300_s5 }
 0x7e8   :  { %v726_v56 = vpop.permute.xlu1 %725 }
 0x7e9   :  { %v3574_v11 = vadd.f32 %v726_v56, %v718_v10 }
 0x7eb   :  { %3189 = vtanh.f32 %v3574_v11 }
 0x7f5   :  { %v3190_v12 = vpop.eup %3189 }
 0x7f6   :  { %731 = vrot.lane.b32.xlu0 %v3190_v12, %s3299_s16 }
 0x868   :  { %v732_v17 = vpop.permute.xlu0 %731 }
 0x869   :  { %v734_v19 = vmul.f32 %v3188_v6, %v732_v17 }
 0x86b   :  { %736 = vrot.lane.b32.xlu1 %v734_v19, %s3300_s5 }
 0x8dd   :  { %v737_v20 = vpop.permute.xlu1 %736 }
 0x8de   :  { %2778 = vmatmul.mubr.msk.f32.vlgmr.msra.gmra.mrb[4].mxu0 %vm137_vm0, %v737_v20 }
 0x8df   :  { %3042 = vmatpush3.bf16.msra.mxu0 %v3418_v33  ;;  %2821 = vmatprep.mubr.msk.f32.mxu0 %vm3297_vm1, %v3298_v49 }
 0x8e0   :  { %3043 = vmatprep.subr.bf16.mxu0 %v3296_v13 }
 0x8e3   :  { %3045 = vmatpush3.bf16.msra.mxu0 %v3434_v42 }
 0x8e4   :  { %3046 = vmatprep.subr.bf16.mxu0 %v3296_v13 }
 0x9b1   :  { %v806_v9 = vpop.f32.mrb[4].mxu0 }
 0x9b2   :  { %v3135_v21 = vadd.f32 %v3527_v23, %v806_v9  ;;  %v2779_v22 = vpop.f32.mrb[5].mxu0 }
 0x9b4   :  { %3191 = vtanh.f32 %v3135_v21  ;;  %v2529_v25 = vmul.f32 -1.442695, %v3135_v21 }
 0x9b6   :  { %3193 = vpow2.f32 %v2529_v25 }
 0x9be   :  { %v3192_v24 = vpop.eup %3191 }
 0x9bf   :  { %820 = vrot.lane.b32.xlu0 %v3192_v24, %s3299_s16  ;;  %v244_v24 = vadd.f32 %v3565_v14, %v3487_v59 }
 0x9c0   :  { %v3194_v26 = vpop.eup %3193 }
 0x9c1   :  { %v814_v27 = vadd.f32 1.0, %v3194_v26 }
 0x9c3   :  { %3195 = vrcp.f32 %v814_v27 }
 0x9cd   :  { %v3196_v28 = vpop.eup %3195 }
 0x9ce   :  { %v818_v31 = vmul.f32 %v3196_v28, %v3535_v38  ;;  %v239_v38 = vadd.f32 %v3487_v59, %v3567_v15 }
 0xa31   :  { %v821_v29 = vpop.permute.xlu0 %820 }
 0xa32   :  { %v823_v30 = vmul.f32 %v3196_v28, %v821_v29 }
 0xa34   :  { %825 = vrot.lane.b32.xlu1 %v823_v30, %s3300_s5 }
 0xaa6   :  { %v826_v32 = vpop.permute.xlu1 %825 }
 0xaa7   :  { %v3590_v34 = vadd.f32 %v826_v32, %v818_v31 }
 0xaa9   :  { %3197 = vtanh.f32 %v3590_v34 }
 0xab3   :  { %v3198_v35 = vpop.eup %3197 }
 0xab4   :  { %831 = vrot.lane.b32.xlu0 %v3198_v35, %s3299_s16 }
 0xb26   :  { %v832_v36 = vpop.permute.xlu0 %831 }
 0xb27   :  { %v834_v37 = vmul.f32 %v3196_v28, %v832_v36 }
 0xb29   :  { %838 = vrot.lane.b32.xlu1 %v834_v37, %s3300_s5 }
 0xb9b   :  { %v839_v39 = vpop.permute.xlu1 %838 }
 0xb9c   :  { %2789 = vmatmul.mubr.msk.f32.vlgmr.msra.gmra.mrb[8].mxu1 %vm137_vm0, %v839_v39 }
 0xb9d   :  { %3030 = vmatpush3.bf16.msra.mxu1 %v3447_v48  ;;  %2799 = vmatprep.mubr.msk.f32.mxu1 %vm3297_vm1, %v3298_v49 }
 0xb9e   :  { %3031 = vmatprep.subr.bf16.mxu1 %v3296_v13 }
 0xba1   :  { %3033 = vmatpush3.bf16.msra.mxu1 %v3462_v52 }
 0xba2   :  { %3034 = vmatprep.subr.bf16.mxu1 %v3296_v13 }
 0xba4   :  { %2800 = vmatmul.mubr.msk.f32.vlgmr.msra.gmra.mrb[10].mxu1 %vm137_vm0, %v737_v20 }
 0xba5   :  { %3036 = vmatpush3.bf16.msra.mxu1 %v3504_v16  ;;  %2810 = vmatprep.mubr.msk.f32.mxu1 %vm3297_vm1, %v3298_v49 }
 0xba6   :  { %3037 = vmatprep.subr.bf16.mxu1 %v3296_v13 }
 0xba9   :  { %3039 = vmatpush3.bf16.msra.mxu1 %v3510_v18 }
 0xbaa   :  { %3058 = vmatprep.subr.bf16.mxu1 %v3296_v13 }
 0xc77   :  { %v978_v40 = vpop.f32.mrb[10].mxu1 }
 0xc78   :  { %v982_v41 = vadd.f32 %v978_v40, %v239_v38  ;;  %v2801_v43 = vpop.f32.mrb[11].mxu1 }
 0xc7a   :  { %3199 = vtanh.f32 %v982_v41  ;;  %v2532_v45 = vmul.f32 -1.442695, %v982_v41 }
 0xc7c   :  { %3201 = vpow2.f32 %v2532_v45 }
 0xc84   :  { %v3200_v44 = vpop.eup %3199 }
 0xc85   :  { %992 = vrot.lane.b32.xlu0 %v3200_v44, %s3299_s16 }
 0xc86   :  { %v3202_v46 = vpop.eup %3201 }
 0xc87   :  { %v986_v47 = vadd.f32 1.0, %v3202_v46 }
 0xc89   :  { %3203 = vrcp.f32 %v986_v47 }
 0xc93   :  { %v3204_v50 = vpop.eup %3203 }
 0xc94   :  { %v990_v60 = vmul.f32 %v3204_v50, %v3574_v11 }
 0xcf7   :  { %v993_v51 = vpop.permute.xlu0 %992 }
 0xcf8   :  { %v995_v58 = vmul.f32 %v3204_v50, %v993_v51 }
 0xcfa   :  { %997 = vrot.lane.b32.xlu1 %v995_v58, %s3300_s5 }
 0xd6c   :  { %v998_v61 = vpop.permute.xlu1 %997 }
 0xd6d   :  { %v3614_v15 = vadd.f32 %v998_v61, %v990_v60 }
 0xd6f   :  { %3205 = vtanh.f32 %v3614_v15 }
 0xd79   :  { %v3206_v62 = vpop.eup %3205 }
 0xd7a   :  { %1003 = vrot.lane.b32.xlu0 %v3206_v62, %s3299_s16 }
 0xdec   :  { %v1004_v63 = vpop.permute.xlu0 %1003 }
 0xded   :  { %v1006_v0 = vmul.f32 %v3204_v50, %v1004_v63 }
 0xdef   :  { %1008 = vrot.lane.b32.xlu1 %v1006_v0, %s3300_s5 }
 0xe61   :  { %v1009_v1 = vpop.permute.xlu1 %1008 }
 0xe62   :  { %2811 = vmatmul.mubr.msk.f32.vlgmr.msra.gmra.mrb[8].mxu1 %vm137_vm0, %v1009_v1 }
 0xe63   :  { %3060 = vmatpush3.bf16.msra.mxu1 %v3418_v33  ;;  %2854 = vmatprep.mubr.msk.f32.mxu1 %vm3297_vm1, %v3298_v49 }
 0xe64   :  { %3061 = vmatprep.subr.bf16.mxu1 %v3296_v13 }
 0xe67   :  { %3063 = vmatpush3.bf16.msra.mxu1 %v3434_v42 }
 0xe68   :  { %3064 = vmatprep.subr.bf16.mxu1 %v3296_v13 }
 0xf35   :  { %v1078_v2 = vpop.f32.mrb[8].mxu1 }
 0xf36   :  { %v3136_v3 = vadd.f32 %v3527_v23, %v1078_v2  ;;  %v2812_v4 = vpop.f32.mrb[9].mxu1 }
 0xf37   :  { %v249_v4 = vadd.f32 %v3487_v59, %v3476_v54 }
 0xf38   :  { %3207 = vtanh.f32 %v3136_v3  ;;  %v2534_v6 = vmul.f32 -1.442695, %v3136_v3 }
 0xf3a   :  { %3209 = vpow2.f32 %v2534_v6 }
 0xf42   :  { %v3208_v5 = vpop.eup %3207 }
 0xf43   :  { %1092 = vrot.lane.b32.xlu0 %v3208_v5, %s3299_s16 }
 0xf44   :  { %v3210_v7 = vpop.eup %3209 }
 0xf45   :  { %v1086_v8 = vadd.f32 1.0, %v3210_v7 }
 0xf47   :  { %3211 = vrcp.f32 %v1086_v8 }
 0xf51   :  { %v3212_v10 = vpop.eup %3211 }
 0xf52   :  { %v1090_v12 = vmul.f32 %v3212_v10, %v3590_v34 }
 0xfb5   :  { %v1093_v56 = vpop.permute.xlu0 %1092 }
 0xfb6   :  { %v1095_v11 = vmul.f32 %v3212_v10, %v1093_v56 }
 0xfb8   :  { %1097 = vrot.lane.b32.xlu1 %v1095_v11, %s3300_s5 }
0x102a   :  { %v1098_v17 = vpop.permute.xlu1 %1097 }
0x102b   :  { %v3630_v19 = vadd.f32 %v1098_v17, %v1090_v12 }
0x102d   :  { %3213 = vtanh.f32 %v3630_v19 }
0x1037   :  { %v3214_v20 = vpop.eup %3213 }
0x1038   :  { %1103 = vrot.lane.b32.xlu0 %v3214_v20, %s3299_s16 }
0x10aa   :  { %v1104_v9 = vpop.permute.xlu0 %1103 }
0x10ab   :  { %v1106_v21 = vmul.f32 %v3212_v10, %v1104_v9 }
0x10ad   :  { %1110 = vrot.lane.b32.xlu1 %v1106_v21, %s3300_s5 }
0x111f   :  { %v1111_v22 = vpop.permute.xlu1 %1110 }
0x1120   :  { %2822 = vmatmul.mubr.msk.f32.vlgmr.msra.gmra.mrb[8].mxu0 %vm137_vm0, %v1111_v22 }
0x1121   :  { %3048 = vmatpush3.bf16.msra.mxu0 %v3447_v48  ;;  %2832 = vmatprep.mubr.msk.f32.mxu0 %vm3297_vm1, %v3298_v49 }
0x1122   :  { %3049 = vmatprep.subr.bf16.mxu0 %v3296_v13 }
0x1125   :  { %3051 = vmatpush3.bf16.msra.mxu0 %v3462_v52 }
0x1126   :  { %3052 = vmatprep.subr.bf16.mxu0 %v3296_v13 }
0x1128   :  { %2833 = vmatmul.mubr.msk.f32.vlgmr.msra.gmra.mrb[10].mxu0 %vm137_vm0, %v1009_v1 }
0x1129   :  { %3054 = vmatpush3.bf16.msra.mxu0 %v3504_v16  ;;  %2843 = vmatprep.mubr.msk.f32.mxu0 %vm3297_vm1, %v3298_v49 }
0x112a   :  { %3055 = vmatprep.subr.bf16.mxu0 %v3296_v13 }
0x112d   :  { %3057 = vmatpush3.bf16.msra.mxu0 %v3510_v18 }
0x112e   :  { %3076 = vmatprep.subr.bf16.mxu0 %v3296_v13 }
0x11fb   :  { %v1250_v25 = vpop.f32.mrb[10].mxu0 }
0x11fc   :  { %v1254_v26 = vadd.f32 %v1250_v25, %v244_v24  ;;  %v2834_v27 = vpop.f32.mrb[11].mxu0 }
0x11fe   :  { %3215 = vtanh.f32 %v1254_v26  ;;  %v2537_v29 = vmul.f32 -1.442695, %v1254_v26 }
0x1200   :  { %3217 = vpow2.f32 %v2537_v29 }
0x1208   :  { %v3216_v28 = vpop.eup %3215 }
0x1209   :  { %1264 = vrot.lane.b32.xlu0 %v3216_v28, %s3299_s16 }
0x120a   :  { %v3218_v30 = vpop.eup %3217 }
0x120b   :  { %v1258_v31 = vadd.f32 1.0, %v3218_v30 }
0x120d   :  { %3219 = vrcp.f32 %v1258_v31 }
0x1217   :  { %v3220_v32 = vpop.eup %3219 }
0x1218   :  { %v1262_v36 = vmul.f32 %v3220_v32, %v3614_v15 }
0x127b   :  { %v1265_v34 = vpop.permute.xlu0 %1264 }
0x127c   :  { %v1267_v35 = vmul.f32 %v3220_v32, %v1265_v34 }
0x127e   :  { %1269 = vrot.lane.b32.xlu1 %v1267_v35, %s3300_s5 }
0x12f0   :  { %v1270_v14 = vpop.permute.xlu1 %1269 }
0x12f1   :  { %v3654_v37 = vadd.f32 %v1270_v14, %v1262_v36 }
0x12f3   :  { %3221 = vtanh.f32 %v3654_v37 }
0x12fd   :  { %v3222_v39 = vpop.eup %3221 }
0x12fe   :  { %1275 = vrot.lane.b32.xlu0 %v3222_v39, %s3299_s16 }
0x1370   :  { %v1276_v38 = vpop.permute.xlu0 %1275 }
0x1371   :  { %v1278_v40 = vmul.f32 %v3220_v32, %v1276_v38 }
0x1373   :  { %1280 = vrot.lane.b32.xlu1 %v1278_v40, %s3300_s5 }
0x13e5   :  { %v1281_v41 = vpop.permute.xlu1 %1280 }
0x13e6   :  { %2844 = vmatmul.mubr.msk.f32.vlgmr.msra.gmra.mrb[8].mxu0 %vm137_vm0, %v1281_v41 }
0x13e7   :  { %3078 = vmatpush3.bf16.msra.mxu0 %v3418_v33  ;;  %2887 = vmatprep.mubr.msk.f32.mxu0 %vm3297_vm1, %v3298_v49 }
0x13e8   :  { %3079 = vmatprep.subr.bf16.mxu0 %v3296_v13 }
0x13eb   :  { %3081 = vmatpush3.bf16.msra.mxu0 %v3434_v42 }
0x13ec   :  { %3082 = vmatprep.subr.bf16.mxu0 %v3296_v13 }
0x14b9   :  { %v1350_v43 = vpop.f32.mrb[8].mxu0 }
0x14ba   :  { %v3137_v44 = vadd.f32 %v3527_v23, %v1350_v43  ;;  %v2845_v45 = vpop.f32.mrb[9].mxu0 }
0x14bc   :  { %3223 = vtanh.f32 %v3137_v44  ;;  %v2539_v47 = vmul.f32 -1.442695, %v3137_v44  ;;  %v254_v44 = vadd.f32 %v3474_v53, %v3487_v59 }
0x14be   :  { %3225 = vpow2.f32 %v2539_v47 }
0x14c6   :  { %v3224_v46 = vpop.eup %3223 }
0x14c7   :  { %1364 = vrot.lane.b32.xlu0 %v3224_v46, %s3299_s16 }
0x14c8   :  { %v3226_v50 = vpop.eup %3225 }
0x14c9   :  { %v1358_v51 = vadd.f32 1.0, %v3226_v50 }
0x14cb   :  { %3227 = vrcp.f32 %v1358_v51 }
0x14d5   :  { %v3228_v58 = vpop.eup %3227 }
0x14d6   :  { %v1362_v15 = vmul.f32 %v3228_v58, %v3630_v19 }
0x1539   :  { %v1365_v60 = vpop.permute.xlu0 %1364 }
0x153a   :  { %v1367_v61 = vmul.f32 %v3228_v58, %v1365_v60 }
0x153c   :  { %1369 = vrot.lane.b32.xlu1 %v1367_v61, %s3300_s5 }
0x15ae   :  { %v1370_v62 = vpop.permute.xlu1 %1369 }
0x15af   :  { %v3670_v63 = vadd.f32 %v1370_v62, %v1362_v15 }
0x15b1   :  { %3229 = vtanh.f32 %v3670_v63 }
0x15bb   :  { %v3230_v0 = vpop.eup %3229 }
0x15bc   :  { %1375 = vrot.lane.b32.xlu0 %v3230_v0, %s3299_s16 }
0x162e   :  { %v1376_v1 = vpop.permute.xlu0 %1375 }
0x162f   :  { %v1378_v2 = vmul.f32 %v3228_v58, %v1376_v1 }
0x1631   :  { %1382 = vrot.lane.b32.xlu1 %v1378_v2, %s3300_s5 }
0x16a3   :  { %v1383_v3 = vpop.permute.xlu1 %1382 }
0x16a4   :  { %2855 = vmatmul.mubr.msk.f32.vlgmr.msra.gmra.mrb[12].mxu1 %vm137_vm0, %v1383_v3 }
0x16a5   :  { %3066 = vmatpush3.bf16.msra.mxu1 %v3447_v48  ;;  %2865 = vmatprep.mubr.msk.f32.mxu1 %vm3297_vm1, %v3298_v49 }
0x16a6   :  { %3067 = vmatprep.subr.bf16.mxu1 %v3296_v13 }
0x16a9   :  { %3069 = vmatpush3.bf16.msra.mxu1 %v3462_v52 }
0x16aa   :  { %3070 = vmatprep.subr.bf16.mxu1 %v3296_v13 }
0x16ac   :  { %2866 = vmatmul.mubr.msk.f32.vlgmr.msra.gmra.mrb[14].mxu1 %vm137_vm0, %v1281_v41 }
0x16ad   :  { %3072 = vmatpush3.bf16.msra.mxu1 %v3504_v16  ;;  %2876 = vmatprep.mubr.msk.f32.mxu1 %vm3297_vm1, %v3298_v49 }
0x16ae   :  { %3073 = vmatprep.subr.bf16.mxu1 %v3296_v13 }
0x16b1   :  { %3075 = vmatpush3.bf16.msra.mxu1 %v3510_v18 }
0x16b2   :  { %3094 = vmatprep.subr.bf16.mxu1 %v3296_v13 }
0x177f   :  { %v1522_v5 = vpop.f32.mrb[14].mxu1 }
0x1780   :  { %v1526_v6 = vadd.f32 %v1522_v5, %v249_v4  ;;  %v2867_v7 = vpop.f32.mrb[15].mxu1 }
0x1782   :  { %3231 = vtanh.f32 %v1526_v6  ;;  %v2542_v10 = vmul.f32 -1.442695, %v1526_v6 }
0x1784   :  { %3233 = vpow2.f32 %v2542_v10 }
0x178c   :  { %v3232_v8 = vpop.eup %3231 }
0x178d   :  { %1536 = vrot.lane.b32.xlu0 %v3232_v8, %s3299_s16 }
0x178e   :  { %v3234_v56 = vpop.eup %3233 }
0x178f   :  { %v1530_v11 = vadd.f32 1.0, %v3234_v56 }
0x1791   :  { %3235 = vrcp.f32 %v1530_v11 }
0x179b   :  { %v3236_v12 = vpop.eup %3235 }
0x179c   :  { %v1534_v20 = vmul.f32 %v3236_v12, %v3654_v37 }
0x17ff   :  { %v1537_v17 = vpop.permute.xlu0 %1536 }
0x1800   :  { %v1539_v19 = vmul.f32 %v3236_v12, %v1537_v17 }
0x1802   :  { %1541 = vrot.lane.b32.xlu1 %v1539_v19, %s3300_s5 }
0x1874   :  { %v1542_v54 = vpop.permute.xlu1 %1541 }
0x1875   :  { %v3694_v9 = vadd.f32 %v1542_v54, %v1534_v20 }
0x1877   :  { %3237 = vtanh.f32 %v3694_v9 }
0x1881   :  { %v3238_v21 = vpop.eup %3237 }
0x1882   :  { %1547 = vrot.lane.b32.xlu0 %v3238_v21, %s3299_s16 }
0x18f4   :  { %v1548_v22 = vpop.permute.xlu0 %1547 }
0x18f5   :  { %v1550_v24 = vmul.f32 %v3236_v12, %v1548_v22 }
0x18f7   :  { %1552 = vrot.lane.b32.xlu1 %v1550_v24, %s3300_s5  ;;  %v259_v24 = vadd.f32 %v3487_v59, %v3482_v57 }
0x1969   :  { %v1553_v25 = vpop.permute.xlu1 %1552 }
0x196a   :  { %2877 = vmatmul.mubr.msk.f32.vlgmr.msra.gmra.mrb[12].mxu1 %vm137_vm0, %v1553_v25 }
0x196b   :  { %3096 = vmatpush3.bf16.msra.mxu1 %v3418_v33  ;;  %2920 = vmatprep.mubr.msk.f32.mxu1 %vm3297_vm1, %v3298_v49 }
0x196c   :  { %3097 = vmatprep.subr.bf16.mxu1 %v3296_v13 }
0x196f   :  { %3099 = vmatpush3.bf16.msra.mxu1 %v3434_v42 }
0x1970   :  { %3100 = vmatprep.subr.bf16.mxu1 %v3296_v13 }
0x1a3d   :  { %v1622_v26 = vpop.f32.mrb[12].mxu1 }
0x1a3e   :  { %v3138_v27 = vadd.f32 %v3527_v23, %v1622_v26  ;;  %v2878_v28 = vpop.f32.mrb[13].mxu1 }
0x1a40   :  { %3239 = vtanh.f32 %v3138_v27  ;;  %v2544_v30 = vmul.f32 -1.442695, %v3138_v27 }
0x1a42   :  { %3241 = vpow2.f32 %v2544_v30 }
0x1a4a   :  { %v3240_v29 = vpop.eup %3239 }
0x1a4b   :  { %1636 = vrot.lane.b32.xlu0 %v3240_v29, %s3299_s16 }
0x1a4c   :  { %v3242_v31 = vpop.eup %3241 }
0x1a4d   :  { %v1630_v32 = vadd.f32 1.0, %v3242_v31 }
0x1a4f   :  { %3243 = vrcp.f32 %v1630_v32 }
0x1a59   :  { %v3244_v34 = vpop.eup %3243 }
0x1a5a   :  { %v1634_v14 = vmul.f32 %v3244_v34, %v3670_v63 }
0x1abd   :  { %v1637_v35 = vpop.permute.xlu0 %1636 }
0x1abe   :  { %v1639_v36 = vmul.f32 %v3244_v34, %v1637_v35 }
0x1ac0   :  { %1641 = vrot.lane.b32.xlu1 %v1639_v36, %s3300_s5 }
0x1b32   :  { %v1642_v37 = vpop.permute.xlu1 %1641 }
0x1b33   :  { %v3710_v39 = vadd.f32 %v1642_v37, %v1634_v14 }
0x1b35   :  { %3245 = vtanh.f32 %v3710_v39 }
0x1b3f   :  { %v3246_v38 = vpop.eup %3245 }
0x1b40   :  { %1647 = vrot.lane.b32.xlu0 %v3246_v38, %s3299_s16 }
0x1bb2   :  { %v1648_v40 = vpop.permute.xlu0 %1647 }
0x1bb3   :  { %v1650_v41 = vmul.f32 %v3244_v34, %v1648_v40 }
0x1bb5   :  { %1654 = vrot.lane.b32.xlu1 %v1650_v41, %s3300_s5 }
0x1c27   :  { %v1655_v43 = vpop.permute.xlu1 %1654 }
0x1c28   :  { %2888 = vmatmul.mubr.msk.f32.vlgmr.msra.gmra.mrb[12].mxu0 %vm137_vm0, %v1655_v43 }
0x1c29   :  { %3084 = vmatpush3.bf16.msra.mxu0 %v3447_v48  ;;  %2898 = vmatprep.mubr.msk.f32.mxu0 %vm3297_vm1, %v3298_v49 }
0x1c2a   :  { %3085 = vmatprep.subr.bf16.mxu0 %v3296_v13 }
0x1c2d   :  { %3087 = vmatpush3.bf16.msra.mxu0 %v3462_v52 }
0x1c2e   :  { %3088 = vmatprep.subr.bf16.mxu0 %v3296_v13 }
0x1c30   :  { %2899 = vmatmul.mubr.msk.f32.vlgmr.msra.gmra.mrb[14].mxu0 %vm137_vm0, %v1553_v25 }
0x1c31   :  { %3090 = vmatpush3.bf16.msra.mxu0 %v3504_v16  ;;  %2909 = vmatprep.mubr.msk.f32.mxu0 %vm3297_vm1, %v3298_v49 }
0x1c32   :  { %3091 = vmatprep.subr.bf16.mxu0 %v3296_v13 }
0x1c35   :  { %3093 = vmatpush3.bf16.msra.mxu0 %v3510_v18 }
0x1c36   :  { %3112 = vmatprep.subr.bf16.mxu0 %v3296_v13 }
0x1d03   :  { %v1794_v45 = vpop.f32.mrb[14].mxu0 }
0x1d04   :  { %v1798_v46 = vadd.f32 %v1794_v45, %v254_v44  ;;  %v2900_v47 = vpop.f32.mrb[15].mxu0 }
0x1d06   :  { %3247 = vtanh.f32 %v1798_v46  ;;  %v2547_v51 = vmul.f32 -1.442695, %v1798_v46 }
0x1d08   :  { %3249 = vpow2.f32 %v2547_v51 }
0x1d10   :  { %v3248_v50 = vpop.eup %3247 }
0x1d11   :  { %1808 = vrot.lane.b32.xlu0 %v3248_v50, %s3299_s16 }
0x1d12   :  { %v3250_v58 = vpop.eup %3249 }
0x1d13   :  { %v1802_v60 = vadd.f32 1.0, %v3250_v58 }
0x1d15   :  { %3251 = vrcp.f32 %v1802_v60 }
0x1d1f   :  { %v3252_v61 = vpop.eup %3251 }
0x1d20   :  { %v1806_v63 = vmul.f32 %v3252_v61, %v3694_v9 }
0x1d83   :  { %v1809_v15 = vpop.permute.xlu0 %1808 }
0x1d84   :  { %v1811_v62 = vmul.f32 %v3252_v61, %v1809_v15 }
0x1d86   :  { %1813 = vrot.lane.b32.xlu1 %v1811_v62, %s3300_s5 }
0x1df8   :  { %v1814_v53 = vpop.permute.xlu1 %1813 }
0x1df9   :  { %v3734_v0 = vadd.f32 %v1814_v53, %v1806_v63 }
0x1dfb   :  { %3253 = vtanh.f32 %v3734_v0 }
0x1e05   :  { %v3254_v1 = vpop.eup %3253 }
0x1e06   :  { %1819 = vrot.lane.b32.xlu0 %v3254_v1, %s3299_s16 }
0x1e78   :  { %v1820_v2 = vpop.permute.xlu0 %1819 }
0x1e79   :  { %v1822_v3 = vmul.f32 %v3252_v61, %v1820_v2 }
0x1e7b   :  { %1824 = vrot.lane.b32.xlu1 %v1822_v3, %s3300_s5 }
0x1eed   :  { %v1825_v4 = vpop.permute.xlu1 %1824 }
0x1eee   :  { %2910 = vmatmul.mubr.msk.f32.vlgmr.msra.gmra.mrb[12].mxu0 %vm137_vm0, %v1825_v4 }
0x1eef   :  { %3114 = vmatpush3.bf16.msra.mxu0 %v3418_v33  ;;  %2953 = vmatprep.mubr.msk.f32.mxu0 %vm3297_vm1, %v3298_v49 }
0x1ef0   :  { %3115 = vmatprep.subr.bf16.mxu0 %v3296_v13 }
0x1ef3   :  { %3117 = vmatpush3.bf16.msra.mxu0 %v3434_v42 }
0x1ef4   :  { %3118 = vmatprep.subr.bf16.mxu0 %v3296_v13 }
0x1fc1   :  { %v1894_v5 = vpop.f32.mrb[12].mxu0 }
0x1fc2   :  { %v3139_v6 = vadd.f32 %v3527_v23, %v1894_v5  ;;  %v2911_v7 = vpop.f32.mrb[13].mxu0 }
0x1fc4   :  { %3255 = vtanh.f32 %v3139_v6  ;;  %v2549_v10 = vmul.f32 -1.442695, %v3139_v6 }
0x1fc6   :  { %3257 = vpow2.f32 %v2549_v10 }
0x1fce   :  { %v3256_v8 = vpop.eup %3255 }
0x1fcf   :  { %1908 = vrot.lane.b32.xlu0 %v3256_v8, %s3299_s16 }
0x1fd0   :  { %v3258_v33 = vpop.eup %3257 }
0x1fd1   :  { %v1902_v56 = vadd.f32 1.0, %v3258_v33 }
0x1fd3   :  { %3259 = vrcp.f32 %v1902_v56 }
0x1fdd   :  { %v3260_v11 = vpop.eup %3259 }
0x1fde   :  { %v1906_v42 = vmul.f32 %v3260_v11, %v3710_v39 }
0x2041   :  { %v1909_v12 = vpop.permute.xlu0 %1908 }
0x2042   :  { %v1911_v17 = vmul.f32 %v3260_v11, %v1909_v12 }
0x2044   :  { %1913 = vrot.lane.b32.xlu1 %v1911_v17, %s3300_s5 }
0x20b6   :  { %v1914_v19 = vpop.permute.xlu1 %1913 }
0x20b7   :  { %v1916_v20 = vadd.f32 %v1914_v19, %v1906_v42 }
0x20b9   :  { %3261 = vtanh.f32 %v1916_v20 }
0x20c3   :  { %v3262_v54 = vpop.eup %3261 }
0x20c4   :  { %1919 = vrot.lane.b32.xlu0 %v3262_v54, %s3299_s16 }
0x2136   :  { %v1920_v9 = vpop.permute.xlu0 %1919 }
0x2137   :  { %v1922_v21 = vmul.f32 %v3260_v11, %v1920_v9 }
0x2139   :  { %1926 = vrot.lane.b32.xlu1 %v1922_v21, %s3300_s5 }
0x21ab   :  { %v1927_v22 = vpop.permute.xlu1 %1926 }
0x21ac   :  { %2921 = vmatmul.mubr.msk.f32.vlgmr.msra.gmra.mrb[16].mxu1 %vm137_vm0, %v1927_v22 }
0x21ad   :  { %3102 = vmatpush3.bf16.msra.mxu1 %v3447_v48  ;;  %2931 = vmatprep.mubr.msk.f32.mxu1 %vm3297_vm1, %v3298_v49 }
0x21ae   :  { %3103 = vmatprep.subr.bf16.mxu1 %v3296_v13 }
0x21b1   :  { %3105 = vmatpush3.bf16.msra.mxu1 %v3462_v52 }
0x21b2   :  { %3106 = vmatprep.subr.bf16.mxu1 %v3296_v13 }
0x21b4   :  { %2932 = vmatmul.mubr.msk.f32.vlgmr.msra.gmra.mrb[18].mxu1 %vm137_vm0, %v1825_v4 }
0x21b5   :  { %3108 = vmatpush3.bf16.msra.mxu1 %v3504_v16  ;;  %2942 = vmatprep.mubr.msk.f32.mxu1 %vm3297_vm1, %v3298_v49 }
0x21b6   :  { %3109 = vmatprep.subr.bf16.mxu1 %v3296_v13 }
0x21b9   :  { %3111 = vmatpush3.bf16.msra.mxu1 %v3510_v18 }
0x2287   :  { %v2066_v25 = vpop.f32.mrb[18].mxu1 }
0x2288   :  { %v2070_v26 = vadd.f32 %v2066_v25, %v259_v24  ;;  %v2933_v27 = vpop.f32.mrb[19].mxu1  ;;  %v2560_v24 = vld [vmem:[%s3829_s9] ss:$0 sm:$0xff] }
0x228a   :  { %3263 = vtanh.f32 %v2070_v26  ;;  %v2552_v29 = vmul.f32 -1.442695, %v2070_v26 }
0x228c   :  { %3265 = vpow2.f32 %v2552_v29 }
0x2294   :  { %v3264_v28 = vpop.eup %3263 }
0x2295   :  { %2080 = vrot.lane.b32.xlu0 %v3264_v28, %s3299_s16 }
0x2296   :  { %v3266_v30 = vpop.eup %3265 }
0x2297   :  { %v2074_v31 = vadd.f32 1.0, %v3266_v30 }
0x2299   :  { %3267 = vrcp.f32 %v2074_v31 }
0x22a3   :  { %v3268_v32 = vpop.eup %3267 }
0x22a4   :  { %v2078_v36 = vmul.f32 %v3268_v32, %v3734_v0 }
0x2307   :  { %v2081_v34 = vpop.permute.xlu0 %2080 }
0x2308   :  { %v2083_v35 = vmul.f32 %v3268_v32, %v2081_v34 }
0x230a   :  { %2085 = vrot.lane.b32.xlu1 %v2083_v35, %s3300_s5 }
0x237c   :  { %v2086_v57 = vpop.permute.xlu1 %2085 }
0x237d   :  { %v2088_v14 = vadd.f32 %v2086_v57, %v2078_v36  ;;  %v16_v57 = vstv %s3830_s10 }
0x237e   :  { %17 = vst [vmem:[#allocation3] sm:$0x1] %v16_v57 }
0x237f   :  { %3269 = vtanh.f32 %v2088_v14 }
0x2389   :  { %v3270_v37 = vpop.eup %3269 }
0x238a   :  { %2091 = vrot.lane.b32.xlu0 %v3270_v37, %s3299_s16 }
0x23fc   :  { %v2092_v39 = vpop.permute.xlu0 %2091 }
0x23fd   :  { %v2094_v38 = vmul.f32 %v3268_v32, %v2092_v39 }
0x23ff   :  { %2096 = vrot.lane.b32.xlu1 %v2094_v38, %s3300_s5  ;;  %v2561_v38 = vld [vmem:[#allocation3] ss:$0 sm:$0xff] }
0x2471   :  { %v2097_v40 = vpop.permute.xlu1 %2096 }
0x2472   :  { %2943 = vmatmul.mubr.msk.f32.vlgmr.msra.gmra.mrb[16].mxu1 %vm137_vm0, %v2097_v40 }
0x2545   :  { %v2166_v41 = vpop.f32.mrb[16].mxu1 }
0x2546   :  { %v3140_v43 = vadd.f32 %v3527_v23, %v2166_v41  ;;  %v2944_v44 = vpop.f32.mrb[17].mxu1 }
0x2548   :  { %3271 = vtanh.f32 %v3140_v43  ;;  %v2554_v46 = vmul.f32 -1.442695, %v3140_v43 }
0x254a   :  { %3273 = vpow2.f32 %v2554_v46 }
0x2552   :  { %v3272_v45 = vpop.eup %3271 }
0x2553   :  { %2180 = vrot.lane.b32.xlu0 %v3272_v45, %s3299_s16 }
0x2554   :  { %v3274_v47 = vpop.eup %3273 }
0x2555   :  { %v2174_v50 = vadd.f32 1.0, %v3274_v47 }
0x2557   :  { %3275 = vrcp.f32 %v2174_v50 }
0x2561   :  { %v3276_v51 = vpop.eup %3275 }
0x2562   :  { %v2178_v61 = vmul.f32 %v3276_v51, %v1916_v20 }
0x25c5   :  { %v2181_v58 = vpop.permute.xlu0 %2180 }
0x25c6   :  { %v2183_v60 = vmul.f32 %v3276_v51, %v2181_v58 }
0x25c8   :  { %2185 = vrot.lane.b32.xlu1 %v2183_v60, %s3300_s5 }
0x263a   :  { %v2186_v15 = vpop.permute.xlu1 %2185 }
0x263b   :  { %v3776_v62 = vadd.f32 %v2186_v15, %v2178_v61 }
0x263d   :  { %3277 = vtanh.f32 %v3776_v62 }
0x2647   :  { %v3278_v63 = vpop.eup %3277 }
0x2648   :  { %2191 = vrot.lane.b32.xlu0 %v3278_v63, %s3299_s16 }
0x26ba   :  { %v2192_v53 = vpop.permute.xlu0 %2191 }
0x26bb   :  { %v2194_v0 = vmul.f32 %v3276_v51, %v2192_v53 }
0x26bd   :  { %2198 = vrot.lane.b32.xlu1 %v2194_v0, %s3300_s5 }
0x272f   :  { %v2199_v1 = vpop.permute.xlu1 %2198 }
0x2730   :  { %2954 = vmatmul.mubr.msk.f32.vlgmr.msra.gmra.mrb[16].mxu0 %vm137_vm0, %v2199_v1 }
0x2731   :  { %3120 = vmatpush3.bf16.msra.mxu0 %v3447_v48  ;;  %2964 = vmatprep.mubr.msk.f32.mxu0 %vm3297_vm1, %v3298_v49  ;;  %v264_v48 = vadd.f32 %v3478_v55, %v3487_v59 }
0x2732   :  { %3121 = vmatprep.subr.bf16.mxu0 %v3296_v13 }
0x2735   :  { %3123 = vmatpush3.bf16.msra.mxu0 %v3462_v52 }
0x2736   :  { %3124 = vmatprep.subr.bf16.mxu0 %v3296_v13 }
0x2738   :  { %2965 = vmatmul.mubr.msk.f32.vlgmr.msra.gmra.mrb[18].mxu0 %vm137_vm0, %v2097_v40 }
0x2739   :  { %3126 = vmatpush3.bf16.msra.mxu0 %v3504_v16  ;;  %2975 = vmatprep.mubr.msk.f32.mxu0 %vm3297_vm1, %v3298_v49 }
0x273a   :  { %3127 = vmatprep.subr.bf16.mxu0 %v3296_v13 }
0x273d   :  { %3129 = vmatpush3.bf16.msra.mxu0 %v3510_v18 }
0x280b   :  { %v2338_v2 = vpop.f32.mrb[18].mxu0 }
0x280c   :  { %v2342_v3 = vadd.f32 %v2338_v2, %v264_v48  ;;  %v2966_v4 = vpop.f32.mrb[19].mxu0 }
0x280e   :  { %3279 = vtanh.f32 %v2342_v3  ;;  %v2557_v5 = vmul.f32 -1.442695, %v2342_v3 }
0x2810   :  { %3281 = vpow2.f32 %v2557_v5 }
0x2818   :  { %v3280_v52 = vpop.eup %3279 }
0x2819   :  { %2352 = vrot.lane.b32.xlu0 %v3280_v52, %s3299_s16 }
0x281a   :  { %v3282_v16 = vpop.eup %3281 }
0x281b   :  { %v2346_v6 = vadd.f32 1.0, %v3282_v16 }
0x281d   :  { %3283 = vrcp.f32 %v2346_v6 }
0x2827   :  { %v3284_v49 = vpop.eup %3283 }
0x2828   :  { %v2350_v18 = vmul.f32 %v3284_v49, %v2088_v14 }
0x288b   :  { %v2353_v7 = vpop.permute.xlu0 %2352 }
0x288c   :  { %v2355_v13 = vmul.f32 %v3284_v49, %v2353_v7 }
0x288e   :  { %2357 = vrot.lane.b32.xlu1 %v2355_v13, %s3300_s5 }
0x2900   :  { %v2358_v8 = vpop.permute.xlu1 %2357 }
0x2901   :  { %v2360_v55 = vadd.f32 %v2358_v8, %v2350_v18 }
0x2903   :  { %3285 = vtanh.f32 %v2360_v55 }
0x290d   :  { %v3286_v59 = vpop.eup %3285 }
0x290e   :  { %2363 = vrot.lane.b32.xlu0 %v3286_v59, %s3299_s16 }
0x2980   :  { %v2364_v10 = vpop.permute.xlu0 %2363 }
0x2981   :  { %v2366_v33 = vmul.f32 %v3284_v49, %v2364_v10 }
0x2983   :  { %2368 = vrot.lane.b32.xlu1 %v2366_v33, %s3300_s5 }
0x29f5   :  { %v2369_v56 = vpop.permute.xlu1 %2368 }
0x29f6   :  { %2976 = vmatmul.mubr.msk.f32.vlgmr.msra.gmra.mrb[16].mxu0 %vm137_vm0, %v2369_v56 }
0x2ac9   :  { %v2438_v11 = vpop.f32.mrb[16].mxu0 }
0x2aca   :  { %v3141_v12 = vadd.f32 %v3527_v23, %v2438_v11  ;;  %v2977_v17 = vpop.f32.mrb[17].mxu0 }
0x2acc   :  { %3287 = vtanh.f32 %v3141_v12  ;;  %v2559_v19 = vmul.f32 -1.442695, %v3141_v12 }
0x2ace   :  { %3289 = vpow2.f32 %v2559_v19 }
0x2ad6   :  { %v3288_v42 = vpop.eup %3287 }
0x2ad7   :  { %2452 = vrot.lane.b32.xlu0 %v3288_v42, %s3299_s16 }
0x2ad8   :  { %v3290_v20 = vpop.eup %3289 }
0x2ad9   :  { %v2446_v54 = vadd.f32 1.0, %v3290_v20 }
0x2adb   :  { %3291 = vrcp.f32 %v2446_v54 }
0x2ae5   :  { %v3292_v9 = vpop.eup %3291 }
0x2ae6   :  { %v2450_v23 = vmul.f32 %v3292_v9, %v3776_v62 }
0x2b49   :  { %v2453_v21 = vpop.permute.xlu0 %2452 }
0x2b4a   :  { %v2455_v22 = vmul.f32 %v3292_v9, %v2453_v21 }
0x2b4c   :  { %2457 = vrot.lane.b32.xlu1 %v2455_v22, %s3300_s5 }
0x2b50   :  { %2473 = vrot.lane.b32.xlu1 %v2560_v24, %s3301_s27 }
0x2bbe   :  { %v2458_v25 = vpop.permute.xlu1 %2457 }
0x2bbf   :  { %v2460_v26 = vadd.f32 %v2458_v25, %v2450_v23 }
0x2bc1   :  { %3293 = vtanh.f32 %v2460_v26 }
0x2bc2   :  { %v2474_v27 = vpop.permute.xlu1 %2473 }
0x2bc3   :  { %v2476_v28 = vmul.f32 %v2474_v27, %v2366_v33 }
0x2bc5   :  { %2478 = vrot.lane.b32.xlu1 %v2476_v28, %s3300_s5 }
0x2bcb   :  { %v3294_v29 = vpop.eup %3293 }
0x2bcc   :  { %2463 = vrot.lane.b32.xlu0 %v3294_v29, %s3299_s16 }
0x2bd0   :  { %2484 = vrot.lane.b32.xlu0 %v2560_v24, %s3299_s16 }
0x2c37   :  { %v2479_v30 = vpop.permute.xlu1 %2478 }
0x2c38   :  { %v2481_v31 = vsel %vm137_vm0, %v2479_v30, 0.0 }
0x2c39   :  { %2482 = vadd.xlane.f32.xlu1 %v2481_v31 }
0x2c3e   :  { %v2464_v32 = vpop.permute.xlu0 %2463 }
0x2c3f   :  { %v2466_v34 = vmul.f32 %v3292_v9, %v2464_v32 }
0x2c42   :  { %v2485_v35 = vpop.permute.xlu0 %2484 }
0x2c43   :  { %v2487_v36 = vmul.f32 %v2485_v35, %v2466_v34 }
0x2c45   :  { %2489 = vrot.lane.b32.xlu0 %v2487_v36, %s3300_s5 }
0x2cb7   :  { %v2490_v14 = vpop.permute.xlu0 %2489 }
0x2cb8   :  { %v2492_v37 = vsel %vm137_vm0, %v2490_v14, 0.0 }
0x2cb9   :  { %2493 = vadd.xlane.f32.xlu0 %v2492_v37 }
0x2cc6   :  { %v2483_v39 = vpop.xlane.xlu1 %2482 }
0x2d46   :  { %v2494_v40 = vpop.xlane.xlu0 %2493 }
0x2d47   :  { %v2495_v41 = vadd.f32 %v2494_v40, %v2483_v39 }
0x2d49   :  { %v2503_v43 = vadd.f32 %v2561_v38, %v2495_v41 }
0x2d4b   :  { %2505 = vst.msk [vmem:[%s3831_s11] sm:$0xff] %vm2504_vm2, %v2503_v43 }

</bundles_post_ra>
